<compile_context>
chip_gen: v7x
topology: tpu7x:2x2x1
jax: 0.10.0
libtpu: 0.0.40
codegen_flags: <defaults>
</compile_context>

<pallas_src>
import jax
import jax.numpy as jnp
from jax.experimental import pallas as pl
from jax.experimental.pallas import tpu as pltpu


def rnn_classifier_kernel(max_len_ref,                     # SMEM scalar prefetch (1,)
                          seq_len_ref, x_ref,
                          w_ih_ref, b_ref, w_hh_ref,
                          w_hid_ref, b_hid_ref, w_out_ref, b_out_ref,
                          logits_ref,
                          h_scr, c_scr, xp_scr):
    tb = pl.program_id(0)
    B, H = h_scr.shape
    TB = x_ref.shape[0] // B          # timesteps per grid block
    t0 = tb * TB

    @pl.when(tb == 0)
    def _init():
        h_scr[...] = jnp.zeros_like(h_scr)
        c_scr[...] = jnp.zeros_like(c_scr)

    # Skip blocks that start after every sequence has ended.
    @pl.when(t0 < max_len_ref[0])
    def _recurrence():
        # Fused input projection for the whole time-block: one MXU GEMM and one
        # lane-dense [*,4H] bias add instead of TB*4 tiny matmuls/broadcasts.
        xp_scr[...] = (
            jnp.dot(x_ref[...], w_ih_ref[...], preferred_element_type=jnp.float32)
            + b_ref[...])

        w_hh = w_hh_ref[...]            # [H, 4H]  hoisted out of the time loop
        seq_len = seq_len_ref[...]      # [B, 1]

        def step(s, carry):
            h, c = carry
            row = pl.multiple_of(s * B, B)
            gates = xp_scr[pl.ds(row, B), :] + jnp.dot(
                h, w_hh, preferred_element_type=jnp.float32)       # [B, 4H]
            # PyTorch LSTM gate order along 4H: i, f, g, o.
            i_g = jax.nn.sigmoid(gates[:, 0 * H:1 * H])
            f_g = jax.nn.sigmoid(gates[:, 1 * H:2 * H])
            g_g = jnp.tanh(gates[:, 2 * H:3 * H])
            o_g = jax.nn.sigmoid(gates[:, 3 * H:4 * H])
            c_new = f_g * c + i_g * g_g
            h_new = o_g * jnp.tanh(c_new)
            # Packed-sequence semantics: freeze state once t >= seq_lengths[b],
            # leaving h at step seq_lengths[b]-1 (== h_n).
            valid = (t0 + s) < seq_len               # [B,1] bool, broadcasts over H
            return jnp.where(valid, h_new, h), jnp.where(valid, c_new, c)

        h_new, c_new = jax.lax.fori_loop(
            0, TB, step, (h_scr[...], c_scr[...]), unroll=True)
        h_scr[...] = h_new
        c_scr[...] = c_new

    @pl.when(tb == pl.num_programs(0) - 1)
    def _classify():
        state = h_scr[...]                           # unidirectional -> no concat
        hid = jnp.tanh(
            jnp.dot(state, w_hid_ref[...], preferred_element_type=jnp.float32)
            + b_hid_ref[...])
        logits = (jnp.dot(hid, w_out_ref[...], preferred_element_type=jnp.float32)
                  + b_out_ref[...])
        logits_ref[...] = logits.astype(logits_ref.dtype)


def rnn_classifier_forward(x_tbd, seq_lengths, params, *, tb_block=8):
    """x_tbd: [T, B, D] f32 (time-major), seq_lengths: [B, 1] i32 -> logits [B, O]."""
    T, B, D = x_tbd.shape
    H = params["w_hh"].shape[0]
    O = params["w_out"].shape[-1]

    n_blocks = pl.cdiv(T, tb_block)
    T_pad = n_blocks * tb_block
    if T_pad != T:
        # Padded steps are masked off by the (t < seq_lengths) freeze.
        x_tbd = jnp.pad(x_tbd, ((0, T_pad - T), (0, 0), (0, 0)))
    # Time-major flatten: row t*B + b; one grid block = TB consecutive timesteps.
    x2d = x_tbd.reshape(T_pad * B, D)

    max_len = jnp.max(seq_lengths).astype(jnp.int32).reshape(1)

    grid_spec = pltpu.PrefetchScalarGridSpec(
        num_scalar_prefetch=1,                                       # max_len -> SMEM
        grid=(n_blocks,),
        in_specs=[
            pl.BlockSpec((B, 1),            lambda i, ml: (0, 0)),   # seq_lengths
            pl.BlockSpec((tb_block * B, D), lambda i, ml: (i, 0)),   # x time-block
            pl.BlockSpec((D, 4 * H),        lambda i, ml: (0, 0)),   # W_ih fused
            pl.BlockSpec((1, 4 * H),        lambda i, ml: (0, 0)),   # bias fused
            pl.BlockSpec((H, 4 * H),        lambda i, ml: (0, 0)),   # W_hh fused
            pl.BlockSpec((H, H),            lambda i, ml: (0, 0)),   # hidden_layer W
            pl.BlockSpec((1, H),            lambda i, ml: (0, 0)),   # hidden_layer b
            pl.BlockSpec((H, O),            lambda i, ml: (0, 0)),   # classifier W
            pl.BlockSpec((1, O),            lambda i, ml: (0, 0)),   # classifier b
        ],
        out_specs=pl.BlockSpec((B, O), lambda i, ml: (0, 0)),
        scratch_shapes=[
            pltpu.VMEM((B, H), jnp.float32),                   # h state
            pltpu.VMEM((B, H), jnp.float32),                   # c state
            pltpu.VMEM((tb_block * B, 4 * H), jnp.float32),    # block X @ W_ih + b
        ],
    )

    return pl.pallas_call(
        rnn_classifier_kernel,
        out_shape=jax.ShapeDtypeStruct((B, O), jnp.float32),
        grid_spec=grid_spec,
        compiler_params=pltpu.CompilerParams(
            dimension_semantics=("arbitrary",)),                # time axis is serial
    )(max_len, seq_lengths, x2d,
      params["w_ih"], params["b"], params["w_hh"],
      params["w_hid"], params["b_hid"], params["w_out"], params["b_out"])


def reference_forward(x_tbd, seq_lengths, params):
    """Pure-JAX reference with identical semantics (for validation)."""
    T, B, D = x_tbd.shape
    H = params["w_hh"].shape[0]
    h = jnp.zeros((B, H), jnp.float32)
    c = jnp.zeros((B, H), jnp.float32)
    for t in range(T):
        gates = x_tbd[t] @ params["w_ih"] + h @ params["w_hh"] + params["b"]
        i_g = jax.nn.sigmoid(gates[:, 0 * H:1 * H])
        f_g = jax.nn.sigmoid(gates[:, 1 * H:2 * H])
        g_g = jnp.tanh(gates[:, 2 * H:3 * H])
        o_g = jax.nn.sigmoid(gates[:, 3 * H:4 * H])
        c_new = f_g * c + i_g * g_g
        h_new = o_g * jnp.tanh(c_new)
        valid = t < seq_lengths
        c = jnp.where(valid, c_new, c)
        h = jnp.where(valid, h_new, h)
    hid = jnp.tanh(h @ params["w_hid"] + params["b_hid"])
    return hid @ params["w_out"] + params["b_out"]


def init_params(key, D, H, O):
    """Deterministic init mirroring PyTorch default U(-1/sqrt(H), 1/sqrt(H))."""
    ks = jax.random.split(key, 7)
    s = 1.0 / jnp.sqrt(H)
    u = lambda k, shape: jax.random.uniform(k, shape, jnp.float32, -s, s)
    return {
        "w_ih":  u(ks[0], (D, 4 * H)),   # fused input->gate weights (i,f,g,o)
        "w_hh":  u(ks[1], (H, 4 * H)),   # fused hidden->gate weights (i,f,g,o)
        "b":     u(ks[2], (1, 4 * H)),   # b_ih + b_hh folded into one fused bias
        "w_hid": u(ks[3], (H, H)),       # nn.Linear(classifier_dim, hidden_dim).weight^T
        "b_hid": u(ks[4], (1, H)),
        "w_out": u(ks[5], (H, O)),       # nn.Linear(hidden_dim, output_dim).weight^T
        "b_out": u(ks[6], (1, O)),
    }


if __name__ == "__main__":
    T, B, D, H, O = 16, 8, 16, 32, 4

    key = jax.random.PRNGKey(0)
    k_x, k_len, k_p = jax.random.split(key, 3)

    x = jax.random.normal(k_x, (T, B, D), jnp.float32)           # time-major inputs
    seq_lengths = jax.random.randint(k_len, (B, 1), 3, T + 1).astype(jnp.int32)
    params = init_params(k_p, D, H, O)

    logits = rnn_classifier_forward(x, seq_lengths, params, tb_block=8)
    logits = jax.block_until_ready(logits)

    ref = reference_forward(x, seq_lengths, params)
    assert logits.shape == (B, O)
    assert jnp.allclose(logits, ref, rtol=2e-2, atol=2e-2), (logits, ref)

    print("KERNEL_OK")
</pallas_src>

<mosaic_0001>
module attributes {stable_mosaic.version = 11 : i64} {
  func.func @rnn_classifier_kernel(%arg0: i32, %arg1: memref<1xi32, #tpu.memory_space<smem>>, %arg2: memref<8x1xi32, #tpu.memory_space<vmem>>, %arg3: memref<64x16xf32, #tpu.memory_space<vmem>>, %arg4: memref<16x128xf32, #tpu.memory_space<vmem>>, %arg5: memref<1x128xf32, #tpu.memory_space<vmem>>, %arg6: memref<32x128xf32, #tpu.memory_space<vmem>>, %arg7: memref<32x32xf32, #tpu.memory_space<vmem>>, %arg8: memref<1x32xf32, #tpu.memory_space<vmem>>, %arg9: memref<32x4xf32, #tpu.memory_space<vmem>>, %arg10: memref<1x4xf32, #tpu.memory_space<vmem>>, %arg11: memref<8x4xf32, #tpu.memory_space<vmem>>, %arg12: memref<8x32xf32, #tpu.memory_space<vmem>>, %arg13: memref<8x32xf32, #tpu.memory_space<vmem>>, %arg14: memref<64x128xf32, #tpu.memory_space<vmem>>) attributes {dimension_semantics = [#tpu.dimension_semantics<arbitrary>], iteration_bounds = array<i64: 2>, scalar_prefetch = 1 : i64, scratch_operands = 3 : i64, tpu.core_type = #tpu.core_type<tc>, window_params = [{pipeline_mode = #tpu.pipeline_mode<synchronous>, transform_indices = @transform_0, window_bounds = array<i64: 8, 1>}, {transform_indices = @transform_1, window_bounds = array<i64: 64, 16>}, {pipeline_mode = #tpu.pipeline_mode<synchronous>, transform_indices = @transform_2, window_bounds = array<i64: 16, 128>}, {pipeline_mode = #tpu.pipeline_mode<synchronous>, transform_indices = @transform_3, window_bounds = array<i64: 1, 128>}, {pipeline_mode = #tpu.pipeline_mode<synchronous>, transform_indices = @transform_4, window_bounds = array<i64: 32, 128>}, {pipeline_mode = #tpu.pipeline_mode<synchronous>, transform_indices = @transform_5, window_bounds = array<i64: 32, 32>}, {pipeline_mode = #tpu.pipeline_mode<synchronous>, transform_indices = @transform_6, window_bounds = array<i64: 1, 32>}, {pipeline_mode = #tpu.pipeline_mode<synchronous>, transform_indices = @transform_7, window_bounds = array<i64: 32, 4>}, {pipeline_mode = #tpu.pipeline_mode<synchronous>, transform_indices = @transform_8, window_bounds = array<i64: 1, 4>}, {pipeline_mode = #tpu.pipeline_mode<synchronous>, transform_indices = @transform_9, window_bounds = array<i64: 8, 4>}]} {
    %c8_i32 = arith.constant 8 : i32
    %0 = arith.muli %arg0, %c8_i32 : i32
    %c0_i32 = arith.constant 0 : i32
    %1 = arith.cmpi eq, %arg0, %c0_i32 : i32
    %2 = arith.extui %1 : i1 to i32
    %c0_i32_0 = arith.constant 0 : i32
    %3 = arith.cmpi ne, %2, %c0_i32_0 : i32
    scf.if %3 {
      %cst = arith.constant 0.000000e+00 : f32
      %11 = vector.broadcast %cst : f32 to vector<8x32xf32>
      %c0_3 = arith.constant 0 : index
      %c0_4 = arith.constant 0 : index
      %12 = vector.load %arg12[%c0_3, %c0_4] : memref<8x32xf32, #tpu.memory_space<vmem>>, vector<8x32xf32>
      tpu.vector_store %arg12[%c0_3, %c0_4], %11 {strides = array<i32>} : memref<8x32xf32, #tpu.memory_space<vmem>>, vector<8x32xf32>,
      %cst_5 = arith.constant 0.000000e+00 : f32
      %13 = vector.broadcast %cst_5 : f32 to vector<8x32xf32>
      %c0_6 = arith.constant 0 : index
      %c0_7 = arith.constant 0 : index
      %14 = vector.load %arg13[%c0_6, %c0_7] : memref<8x32xf32, #tpu.memory_space<vmem>>, vector<8x32xf32>
      tpu.vector_store %arg13[%c0_6, %c0_7], %13 {strides = array<i32>} : memref<8x32xf32, #tpu.memory_space<vmem>>, vector<8x32xf32>,
    } else {
    }
    %c0 = arith.constant 0 : index
    %4 = memref.load %arg1[%c0] : memref<1xi32, #tpu.memory_space<smem>>
    %5 = arith.cmpi slt, %0, %4 : i32
    %6 = arith.extui %5 : i1 to i32
    %c0_i32_1 = arith.constant 0 : i32
    %7 = arith.cmpi ne, %6, %c0_i32_1 : i32
    scf.if %7 {
      %c0_3 = arith.constant 0 : index
      %c0_4 = arith.constant 0 : index
      %11 = vector.load %arg3[%c0_3, %c0_4] : memref<64x16xf32, #tpu.memory_space<vmem>>, vector<64x16xf32>
      %c0_5 = arith.constant 0 : index
      %c0_6 = arith.constant 0 : index
      %12 = vector.load %arg4[%c0_5, %c0_6] : memref<16x128xf32, #tpu.memory_space<vmem>>, vector<16x128xf32>
      %cst = arith.constant dense<0.000000e+00> : vector<64x128xf32>
      %13 = tpu.matmul %11, %12, %cst {dimension_numbers = #tpu.dot_dimension_numbers<[1], [0], [0], [1], [0, 0, 1, 1], [], []>} : vector<64x16xf32>, vector<16x128xf32>, vector<64x128xf32> -> vector<64x128xf32>
      %c0_7 = arith.constant 0 : index
      %c0_8 = arith.constant 0 : index
      %14 = vector.load %arg5[%c0_7, %c0_8] : memref<1x128xf32, #tpu.memory_space<vmem>>, vector<1x128xf32>
      %15 = vector.broadcast %14 : vector<1x128xf32> to vector<64x128xf32>
      %16 = arith.addf %13, %15 : vector<64x128xf32>
      %c0_9 = arith.constant 0 : index
      %c0_10 = arith.constant 0 : index
      %17 = vector.load %arg14[%c0_9, %c0_10] : memref<64x128xf32, #tpu.memory_space<vmem>>, vector<64x128xf32>
      tpu.vector_store %arg14[%c0_9, %c0_10], %16 {strides = array<i32>} : memref<64x128xf32, #tpu.memory_space<vmem>>, vector<64x128xf32>,
      %c0_11 = arith.constant 0 : index
      %c0_12 = arith.constant 0 : index
      %18 = vector.load %arg6[%c0_11, %c0_12] : memref<32x128xf32, #tpu.memory_space<vmem>>, vector<32x128xf32>
      %c0_13 = arith.constant 0 : index
      %c0_14 = arith.constant 0 : index
      %19 = vector.load %arg2[%c0_13, %c0_14] : memref<8x1xi32, #tpu.memory_space<vmem>>, vector<8x1xi32>
      %c0_15 = arith.constant 0 : index
      %c0_16 = arith.constant 0 : index
      %20 = vector.load %arg12[%c0_15, %c0_16] : memref<8x32xf32, #tpu.memory_space<vmem>>, vector<8x32xf32>
      %c0_17 = arith.constant 0 : index
      %c0_18 = arith.constant 0 : index
      %21 = vector.load %arg13[%c0_17, %c0_18] : memref<8x32xf32, #tpu.memory_space<vmem>>, vector<8x32xf32>
      %c0_i32_19 = arith.constant 0 : i32
      %c8_i32_20 = arith.constant 8 : i32
      %22 = arith.muli %c0_i32_19, %c8_i32_20 : i32
      %23 = tpu.assume_multiple %22, 8 : i32
      %24 = arith.index_cast %23 : i32 to index
      %c0_21 = arith.constant 0 : index
      %25 = vector.load %arg14[%24, %c0_21] : memref<64x128xf32, #tpu.memory_space<vmem>>, vector<8x128xf32>
      %cst_22 = arith.constant dense<0.000000e+00> : vector<8x128xf32>
      %26 = tpu.matmul %20, %18, %cst_22 {dimension_numbers = #tpu.dot_dimension_numbers<[1], [0], [0], [1], [0, 0, 1, 1], [], []>} : vector<8x32xf32>, vector<32x128xf32>, vector<8x128xf32> -> vector<8x128xf32>
      %27 = arith.addf %25, %26 : vector<8x128xf32>
      %28 = vector.extract_strided_slice %27 {offsets = [0, 0], sizes = [8, 32], strides = [1, 1]} : vector<8x128xf32> to vector<8x32xf32>
      %29 = arith.negf %28 : vector<8x32xf32>
      %30 = math.exp %29 : vector<8x32xf32>
      %cst_23 = arith.constant 1.000000e+00 : f32
      %31 = vector.broadcast %cst_23 : f32 to vector<8x32xf32>
      %32 = arith.addf %31, %30 : vector<8x32xf32>
      %33 = arith.divf %31, %32 : vector<8x32xf32>
      %34 = vector.extract_strided_slice %27 {offsets = [0, 32], sizes = [8, 32], strides = [1, 1]} : vector<8x128xf32> to vector<8x32xf32>
      %35 = arith.negf %34 : vector<8x32xf32>
      %36 = math.exp %35 : vector<8x32xf32>
      %cst_24 = arith.constant 1.000000e+00 : f32
      %37 = vector.broadcast %cst_24 : f32 to vector<8x32xf32>
      %38 = arith.addf %37, %36 : vector<8x32xf32>
      %39 = arith.divf %37, %38 : vector<8x32xf32>
      %40 = vector.extract_strided_slice %27 {offsets = [0, 64], sizes = [8, 32], strides = [1, 1]} : vector<8x128xf32> to vector<8x32xf32>
      %41 = math.tanh %40 : vector<8x32xf32>
      %42 = vector.extract_strided_slice %27 {offsets = [0, 96], sizes = [8, 32], strides = [1, 1]} : vector<8x128xf32> to vector<8x32xf32>
      %43 = arith.negf %42 : vector<8x32xf32>
      %44 = math.exp %43 : vector<8x32xf32>
      %cst_25 = arith.constant 1.000000e+00 : f32
      %45 = vector.broadcast %cst_25 : f32 to vector<8x32xf32>
      %46 = arith.addf %45, %44 : vector<8x32xf32>
      %47 = arith.divf %45, %46 : vector<8x32xf32>
      %48 = arith.mulf %39, %21 : vector<8x32xf32>
      %49 = arith.mulf %33, %41 : vector<8x32xf32>
      %50 = arith.addf %48, %49 : vector<8x32xf32>
      %51 = math.tanh %50 : vector<8x32xf32>
      %52 = arith.mulf %47, %51 : vector<8x32xf32>
      %53 = arith.addi %0, %c0_i32_19 : i32
      %54 = vector.broadcast %53 : i32 to vector<8x1xi32>
      %55 = arith.cmpi slt, %54, %19 : vector<8x1xi32>
      %56 = vector.shape_cast %55 : vector<8x1xi1> to vector<8x1xi1>
      %57 = vector.broadcast %56 : vector<8x1xi1> to vector<8x32xi1>
      %58 = arith.select %57, %52, %20 : vector<8x32xi1>, vector<8x32xf32>
      %59 = vector.shape_cast %55 : vector<8x1xi1> to vector<8x1xi1>
      %60 = vector.broadcast %59 : vector<8x1xi1> to vector<8x32xi1>
      %61 = arith.select %60, %50, %21 : vector<8x32xi1>, vector<8x32xf32>
      %c1_i32_26 = arith.constant 1 : i32
      %c8_i32_27 = arith.constant 8 : i32
      %62 = arith.muli %c1_i32_26, %c8_i32_27 : i32
      %63 = tpu.assume_multiple %62, 8 : i32
      %64 = arith.index_cast %63 : i32 to index
      %c0_28 = arith.constant 0 : index
      %65 = vector.load %arg14[%64, %c0_28] : memref<64x128xf32, #tpu.memory_space<vmem>>, vector<8x128xf32>
      %cst_29 = arith.constant dense<0.000000e+00> : vector<8x128xf32>
      %66 = tpu.matmul %58, %18, %cst_29 {dimension_numbers = #tpu.dot_dimension_numbers<[1], [0], [0], [1], [0, 0, 1, 1], [], []>} : vector<8x32xf32>, vector<32x128xf32>, vector<8x128xf32> -> vector<8x128xf32>
      %67 = arith.addf %65, %66 : vector<8x128xf32>
      %68 = vector.extract_strided_slice %67 {offsets = [0, 0], sizes = [8, 32], strides = [1, 1]} : vector<8x128xf32> to vector<8x32xf32>
      %69 = arith.negf %68 : vector<8x32xf32>
      %70 = math.exp %69 : vector<8x32xf32>
      %cst_30 = arith.constant 1.000000e+00 : f32
      %71 = vector.broadcast %cst_30 : f32 to vector<8x32xf32>
      %72 = arith.addf %71, %70 : vector<8x32xf32>
      %73 = arith.divf %71, %72 : vector<8x32xf32>
      %74 = vector.extract_strided_slice %67 {offsets = [0, 32], sizes = [8, 32], strides = [1, 1]} : vector<8x128xf32> to vector<8x32xf32>
      %75 = arith.negf %74 : vector<8x32xf32>
      %76 = math.exp %75 : vector<8x32xf32>
      %cst_31 = arith.constant 1.000000e+00 : f32
      %77 = vector.broadcast %cst_31 : f32 to vector<8x32xf32>
      %78 = arith.addf %77, %76 : vector<8x32xf32>
      %79 = arith.divf %77, %78 : vector<8x32xf32>
      %80 = vector.extract_strided_slice %67 {offsets = [0, 64], sizes = [8, 32], strides = [1, 1]} : vector<8x128xf32> to vector<8x32xf32>
      %81 = math.tanh %80 : vector<8x32xf32>
      %82 = vector.extract_strided_slice %67 {offsets = [0, 96], sizes = [8, 32], strides = [1, 1]} : vector<8x128xf32> to vector<8x32xf32>
      %83 = arith.negf %82 : vector<8x32xf32>
      %84 = math.exp %83 : vector<8x32xf32>
      %cst_32 = arith.constant 1.000000e+00 : f32
      %85 = vector.broadcast %cst_32 : f32 to vector<8x32xf32>
      %86 = arith.addf %85, %84 : vector<8x32xf32>
      %87 = arith.divf %85, %86 : vector<8x32xf32>
      %88 = arith.mulf %79, %61 : vector<8x32xf32>
      %89 = arith.mulf %73, %81 : vector<8x32xf32>
      %90 = arith.addf %88, %89 : vector<8x32xf32>
      %91 = math.tanh %90 : vector<8x32xf32>
      %92 = arith.mulf %87, %91 : vector<8x32xf32>
      %93 = arith.addi %0, %c1_i32_26 : i32
      %94 = vector.broadcast %93 : i32 to vector<8x1xi32>
      %95 = arith.cmpi slt, %94, %19 : vector<8x1xi32>
      %96 = vector.shape_cast %95 : vector<8x1xi1> to vector<8x1xi1>
      %97 = vector.broadcast %96 : vector<8x1xi1> to vector<8x32xi1>
      %98 = arith.select %97, %92, %58 : vector<8x32xi1>, vector<8x32xf32>
      %99 = vector.shape_cast %95 : vector<8x1xi1> to vector<8x1xi1>
      %100 = vector.broadcast %99 : vector<8x1xi1> to vector<8x32xi1>
      %101 = arith.select %100, %90, %61 : vector<8x32xi1>, vector<8x32xf32>
      %c2_i32 = arith.constant 2 : i32
      %c8_i32_33 = arith.constant 8 : i32
      %102 = arith.muli %c2_i32, %c8_i32_33 : i32
      %103 = tpu.assume_multiple %102, 8 : i32
      %104 = arith.index_cast %103 : i32 to index
      %c0_34 = arith.constant 0 : index
      %105 = vector.load %arg14[%104, %c0_34] : memref<64x128xf32, #tpu.memory_space<vmem>>, vector<8x128xf32>
      %cst_35 = arith.constant dense<0.000000e+00> : vector<8x128xf32>
      %106 = tpu.matmul %98, %18, %cst_35 {dimension_numbers = #tpu.dot_dimension_numbers<[1], [0], [0], [1], [0, 0, 1, 1], [], []>} : vector<8x32xf32>, vector<32x128xf32>, vector<8x128xf32> -> vector<8x128xf32>
      %107 = arith.addf %105, %106 : vector<8x128xf32>
      %108 = vector.extract_strided_slice %107 {offsets = [0, 0], sizes = [8, 32], strides = [1, 1]} : vector<8x128xf32> to vector<8x32xf32>
      %109 = arith.negf %108 : vector<8x32xf32>
      %110 = math.exp %109 : vector<8x32xf32>
      %cst_36 = arith.constant 1.000000e+00 : f32
      %111 = vector.broadcast %cst_36 : f32 to vector<8x32xf32>
      %112 = arith.addf %111, %110 : vector<8x32xf32>
      %113 = arith.divf %111, %112 : vector<8x32xf32>
      %114 = vector.extract_strided_slice %107 {offsets = [0, 32], sizes = [8, 32], strides = [1, 1]} : vector<8x128xf32> to vector<8x32xf32>
      %115 = arith.negf %114 : vector<8x32xf32>
      %116 = math.exp %115 : vector<8x32xf32>
      %cst_37 = arith.constant 1.000000e+00 : f32
      %117 = vector.broadcast %cst_37 : f32 to vector<8x32xf32>
      %118 = arith.addf %117, %116 : vector<8x32xf32>
      %119 = arith.divf %117, %118 : vector<8x32xf32>
      %120 = vector.extract_strided_slice %107 {offsets = [0, 64], sizes = [8, 32], strides = [1, 1]} : vector<8x128xf32> to vector<8x32xf32>
      %121 = math.tanh %120 : vector<8x32xf32>
      %122 = vector.extract_strided_slice %107 {offsets = [0, 96], sizes = [8, 32], strides = [1, 1]} : vector<8x128xf32> to vector<8x32xf32>
      %123 = arith.negf %122 : vector<8x32xf32>
      %124 = math.exp %123 : vector<8x32xf32>
      %cst_38 = arith.constant 1.000000e+00 : f32
      %125 = vector.broadcast %cst_38 : f32 to vector<8x32xf32>
      %126 = arith.addf %125, %124 : vector<8x32xf32>
      %127 = arith.divf %125, %126 : vector<8x32xf32>
      %128 = arith.mulf %119, %101 : vector<8x32xf32>
      %129 = arith.mulf %113, %121 : vector<8x32xf32>
      %130 = arith.addf %128, %129 : vector<8x32xf32>
      %131 = math.tanh %130 : vector<8x32xf32>
      %132 = arith.mulf %127, %131 : vector<8x32xf32>
      %133 = arith.addi %0, %c2_i32 : i32
      %134 = vector.broadcast %133 : i32 to vector<8x1xi32>
      %135 = arith.cmpi slt, %134, %19 : vector<8x1xi32>
      %136 = vector.shape_cast %135 : vector<8x1xi1> to vector<8x1xi1>
      %137 = vector.broadcast %136 : vector<8x1xi1> to vector<8x32xi1>
      %138 = arith.select %137, %132, %98 : vector<8x32xi1>, vector<8x32xf32>
      %139 = vector.shape_cast %135 : vector<8x1xi1> to vector<8x1xi1>
      %140 = vector.broadcast %139 : vector<8x1xi1> to vector<8x32xi1>
      %141 = arith.select %140, %130, %101 : vector<8x32xi1>, vector<8x32xf32>
      %c3_i32 = arith.constant 3 : i32
      %c8_i32_39 = arith.constant 8 : i32
      %142 = arith.muli %c3_i32, %c8_i32_39 : i32
      %143 = tpu.assume_multiple %142, 8 : i32
      %144 = arith.index_cast %143 : i32 to index
      %c0_40 = arith.constant 0 : index
      %145 = vector.load %arg14[%144, %c0_40] : memref<64x128xf32, #tpu.memory_space<vmem>>, vector<8x128xf32>
      %cst_41 = arith.constant dense<0.000000e+00> : vector<8x128xf32>
      %146 = tpu.matmul %138, %18, %cst_41 {dimension_numbers = #tpu.dot_dimension_numbers<[1], [0], [0], [1], [0, 0, 1, 1], [], []>} : vector<8x32xf32>, vector<32x128xf32>, vector<8x128xf32> -> vector<8x128xf32>
      %147 = arith.addf %145, %146 : vector<8x128xf32>
      %148 = vector.extract_strided_slice %147 {offsets = [0, 0], sizes = [8, 32], strides = [1, 1]} : vector<8x128xf32> to vector<8x32xf32>
      %149 = arith.negf %148 : vector<8x32xf32>
      %150 = math.exp %149 : vector<8x32xf32>
      %cst_42 = arith.constant 1.000000e+00 : f32
      %151 = vector.broadcast %cst_42 : f32 to vector<8x32xf32>
      %152 = arith.addf %151, %150 : vector<8x32xf32>
      %153 = arith.divf %151, %152 : vector<8x32xf32>
      %154 = vector.extract_strided_slice %147 {offsets = [0, 32], sizes = [8, 32], strides = [1, 1]} : vector<8x128xf32> to vector<8x32xf32>
      %155 = arith.negf %154 : vector<8x32xf32>
      %156 = math.exp %155 : vector<8x32xf32>
      %cst_43 = arith.constant 1.000000e+00 : f32
      %157 = vector.broadcast %cst_43 : f32 to vector<8x32xf32>
      %158 = arith.addf %157, %156 : vector<8x32xf32>
      %159 = arith.divf %157, %158 : vector<8x32xf32>
      %160 = vector.extract_strided_slice %147 {offsets = [0, 64], sizes = [8, 32], strides = [1, 1]} : vector<8x128xf32> to vector<8x32xf32>
      %161 = math.tanh %160 : vector<8x32xf32>
      %162 = vector.extract_strided_slice %147 {offsets = [0, 96], sizes = [8, 32], strides = [1, 1]} : vector<8x128xf32> to vector<8x32xf32>
      %163 = arith.negf %162 : vector<8x32xf32>
      %164 = math.exp %163 : vector<8x32xf32>
      %cst_44 = arith.constant 1.000000e+00 : f32
      %165 = vector.broadcast %cst_44 : f32 to vector<8x32xf32>
      %166 = arith.addf %165, %164 : vector<8x32xf32>
      %167 = arith.divf %165, %166 : vector<8x32xf32>
      %168 = arith.mulf %159, %141 : vector<8x32xf32>
      %169 = arith.mulf %153, %161 : vector<8x32xf32>
      %170 = arith.addf %168, %169 : vector<8x32xf32>
      %171 = math.tanh %170 : vector<8x32xf32>
      %172 = arith.mulf %167, %171 : vector<8x32xf32>
      %173 = arith.addi %0, %c3_i32 : i32
      %174 = vector.broadcast %173 : i32 to vector<8x1xi32>
      %175 = arith.cmpi slt, %174, %19 : vector<8x1xi32>
      %176 = vector.shape_cast %175 : vector<8x1xi1> to vector<8x1xi1>
      %177 = vector.broadcast %176 : vector<8x1xi1> to vector<8x32xi1>
      %178 = arith.select %177, %172, %138 : vector<8x32xi1>, vector<8x32xf32>
      %179 = vector.shape_cast %175 : vector<8x1xi1> to vector<8x1xi1>
      %180 = vector.broadcast %179 : vector<8x1xi1> to vector<8x32xi1>
      %181 = arith.select %180, %170, %141 : vector<8x32xi1>, vector<8x32xf32>
      %c4_i32 = arith.constant 4 : i32
      %c8_i32_45 = arith.constant 8 : i32
      %182 = arith.muli %c4_i32, %c8_i32_45 : i32
      %183 = tpu.assume_multiple %182, 8 : i32
      %184 = arith.index_cast %183 : i32 to index
      %c0_46 = arith.constant 0 : index
      %185 = vector.load %arg14[%184, %c0_46] : memref<64x128xf32, #tpu.memory_space<vmem>>, vector<8x128xf32>
      %cst_47 = arith.constant dense<0.000000e+00> : vector<8x128xf32>
      %186 = tpu.matmul %178, %18, %cst_47 {dimension_numbers = #tpu.dot_dimension_numbers<[1], [0], [0], [1], [0, 0, 1, 1], [], []>} : vector<8x32xf32>, vector<32x128xf32>, vector<8x128xf32> -> vector<8x128xf32>
      %187 = arith.addf %185, %186 : vector<8x128xf32>
      %188 = vector.extract_strided_slice %187 {offsets = [0, 0], sizes = [8, 32], strides = [1, 1]} : vector<8x128xf32> to vector<8x32xf32>
      %189 = arith.negf %188 : vector<8x32xf32>
      %190 = math.exp %189 : vector<8x32xf32>
      %cst_48 = arith.constant 1.000000e+00 : f32
      %191 = vector.broadcast %cst_48 : f32 to vector<8x32xf32>
      %192 = arith.addf %191, %190 : vector<8x32xf32>
      %193 = arith.divf %191, %192 : vector<8x32xf32>
      %194 = vector.extract_strided_slice %187 {offsets = [0, 32], sizes = [8, 32], strides = [1, 1]} : vector<8x128xf32> to vector<8x32xf32>
      %195 = arith.negf %194 : vector<8x32xf32>
      %196 = math.exp %195 : vector<8x32xf32>
      %cst_49 = arith.constant 1.000000e+00 : f32
      %197 = vector.broadcast %cst_49 : f32 to vector<8x32xf32>
      %198 = arith.addf %197, %196 : vector<8x32xf32>
      %199 = arith.divf %197, %198 : vector<8x32xf32>
      %200 = vector.extract_strided_slice %187 {offsets = [0, 64], sizes = [8, 32], strides = [1, 1]} : vector<8x128xf32> to vector<8x32xf32>
      %201 = math.tanh %200 : vector<8x32xf32>
      %202 = vector.extract_strided_slice %187 {offsets = [0, 96], sizes = [8, 32], strides = [1, 1]} : vector<8x128xf32> to vector<8x32xf32>
      %203 = arith.negf %202 : vector<8x32xf32>
      %204 = math.exp %203 : vector<8x32xf32>
      %cst_50 = arith.constant 1.000000e+00 : f32
      %205 = vector.broadcast %cst_50 : f32 to vector<8x32xf32>
      %206 = arith.addf %205, %204 : vector<8x32xf32>
      %207 = arith.divf %205, %206 : vector<8x32xf32>
      %208 = arith.mulf %199, %181 : vector<8x32xf32>
      %209 = arith.mulf %193, %201 : vector<8x32xf32>
      %210 = arith.addf %208, %209 : vector<8x32xf32>
      %211 = math.tanh %210 : vector<8x32xf32>
      %212 = arith.mulf %207, %211 : vector<8x32xf32>
      %213 = arith.addi %0, %c4_i32 : i32
      %214 = vector.broadcast %213 : i32 to vector<8x1xi32>
      %215 = arith.cmpi slt, %214, %19 : vector<8x1xi32>
      %216 = vector.shape_cast %215 : vector<8x1xi1> to vector<8x1xi1>
      %217 = vector.broadcast %216 : vector<8x1xi1> to vector<8x32xi1>
      %218 = arith.select %217, %212, %178 : vector<8x32xi1>, vector<8x32xf32>
      %219 = vector.shape_cast %215 : vector<8x1xi1> to vector<8x1xi1>
      %220 = vector.broadcast %219 : vector<8x1xi1> to vector<8x32xi1>
      %221 = arith.select %220, %210, %181 : vector<8x32xi1>, vector<8x32xf32>
      %c5_i32 = arith.constant 5 : i32
      %c8_i32_51 = arith.constant 8 : i32
      %222 = arith.muli %c5_i32, %c8_i32_51 : i32
      %223 = tpu.assume_multiple %222, 8 : i32
      %224 = arith.index_cast %223 : i32 to index
      %c0_52 = arith.constant 0 : index
      %225 = vector.load %arg14[%224, %c0_52] : memref<64x128xf32, #tpu.memory_space<vmem>>, vector<8x128xf32>
      %cst_53 = arith.constant dense<0.000000e+00> : vector<8x128xf32>
      %226 = tpu.matmul %218, %18, %cst_53 {dimension_numbers = #tpu.dot_dimension_numbers<[1], [0], [0], [1], [0, 0, 1, 1], [], []>} : vector<8x32xf32>, vector<32x128xf32>, vector<8x128xf32> -> vector<8x128xf32>
      %227 = arith.addf %225, %226 : vector<8x128xf32>
      %228 = vector.extract_strided_slice %227 {offsets = [0, 0], sizes = [8, 32], strides = [1, 1]} : vector<8x128xf32> to vector<8x32xf32>
      %229 = arith.negf %228 : vector<8x32xf32>
      %230 = math.exp %229 : vector<8x32xf32>
      %cst_54 = arith.constant 1.000000e+00 : f32
      %231 = vector.broadcast %cst_54 : f32 to vector<8x32xf32>
      %232 = arith.addf %231, %230 : vector<8x32xf32>
      %233 = arith.divf %231, %232 : vector<8x32xf32>
      %234 = vector.extract_strided_slice %227 {offsets = [0, 32], sizes = [8, 32], strides = [1, 1]} : vector<8x128xf32> to vector<8x32xf32>
      %235 = arith.negf %234 : vector<8x32xf32>
      %236 = math.exp %235 : vector<8x32xf32>
      %cst_55 = arith.constant 1.000000e+00 : f32
      %237 = vector.broadcast %cst_55 : f32 to vector<8x32xf32>
      %238 = arith.addf %237, %236 : vector<8x32xf32>
      %239 = arith.divf %237, %238 : vector<8x32xf32>
      %240 = vector.extract_strided_slice %227 {offsets = [0, 64], sizes = [8, 32], strides = [1, 1]} : vector<8x128xf32> to vector<8x32xf32>
      %241 = math.tanh %240 : vector<8x32xf32>
      %242 = vector.extract_strided_slice %227 {offsets = [0, 96], sizes = [8, 32], strides = [1, 1]} : vector<8x128xf32> to vector<8x32xf32>
      %243 = arith.negf %242 : vector<8x32xf32>
      %244 = math.exp %243 : vector<8x32xf32>
      %cst_56 = arith.constant 1.000000e+00 : f32
      %245 = vector.broadcast %cst_56 : f32 to vector<8x32xf32>
      %246 = arith.addf %245, %244 : vector<8x32xf32>
      %247 = arith.divf %245, %246 : vector<8x32xf32>
      %248 = arith.mulf %239, %221 : vector<8x32xf32>
      %249 = arith.mulf %233, %241 : vector<8x32xf32>
      %250 = arith.addf %248, %249 : vector<8x32xf32>
      %251 = math.tanh %250 : vector<8x32xf32>
      %252 = arith.mulf %247, %251 : vector<8x32xf32>
      %253 = arith.addi %0, %c5_i32 : i32
      %254 = vector.broadcast %253 : i32 to vector<8x1xi32>
      %255 = arith.cmpi slt, %254, %19 : vector<8x1xi32>
      %256 = vector.shape_cast %255 : vector<8x1xi1> to vector<8x1xi1>
      %257 = vector.broadcast %256 : vector<8x1xi1> to vector<8x32xi1>
      %258 = arith.select %257, %252, %218 : vector<8x32xi1>, vector<8x32xf32>
      %259 = vector.shape_cast %255 : vector<8x1xi1> to vector<8x1xi1>
      %260 = vector.broadcast %259 : vector<8x1xi1> to vector<8x32xi1>
      %261 = arith.select %260, %250, %221 : vector<8x32xi1>, vector<8x32xf32>
      %c6_i32 = arith.constant 6 : i32
      %c8_i32_57 = arith.constant 8 : i32
      %262 = arith.muli %c6_i32, %c8_i32_57 : i32
      %263 = tpu.assume_multiple %262, 8 : i32
      %264 = arith.index_cast %263 : i32 to index
      %c0_58 = arith.constant 0 : index
      %265 = vector.load %arg14[%264, %c0_58] : memref<64x128xf32, #tpu.memory_space<vmem>>, vector<8x128xf32>
      %cst_59 = arith.constant dense<0.000000e+00> : vector<8x128xf32>
      %266 = tpu.matmul %258, %18, %cst_59 {dimension_numbers = #tpu.dot_dimension_numbers<[1], [0], [0], [1], [0, 0, 1, 1], [], []>} : vector<8x32xf32>, vector<32x128xf32>, vector<8x128xf32> -> vector<8x128xf32>
      %267 = arith.addf %265, %266 : vector<8x128xf32>
      %268 = vector.extract_strided_slice %267 {offsets = [0, 0], sizes = [8, 32], strides = [1, 1]} : vector<8x128xf32> to vector<8x32xf32>
      %269 = arith.negf %268 : vector<8x32xf32>
      %270 = math.exp %269 : vector<8x32xf32>
      %cst_60 = arith.constant 1.000000e+00 : f32
      %271 = vector.broadcast %cst_60 : f32 to vector<8x32xf32>
      %272 = arith.addf %271, %270 : vector<8x32xf32>
      %273 = arith.divf %271, %272 : vector<8x32xf32>
      %274 = vector.extract_strided_slice %267 {offsets = [0, 32], sizes = [8, 32], strides = [1, 1]} : vector<8x128xf32> to vector<8x32xf32>
      %275 = arith.negf %274 : vector<8x32xf32>
      %276 = math.exp %275 : vector<8x32xf32>
      %cst_61 = arith.constant 1.000000e+00 : f32
      %277 = vector.broadcast %cst_61 : f32 to vector<8x32xf32>
      %278 = arith.addf %277, %276 : vector<8x32xf32>
      %279 = arith.divf %277, %278 : vector<8x32xf32>
      %280 = vector.extract_strided_slice %267 {offsets = [0, 64], sizes = [8, 32], strides = [1, 1]} : vector<8x128xf32> to vector<8x32xf32>
      %281 = math.tanh %280 : vector<8x32xf32>
      %282 = vector.extract_strided_slice %267 {offsets = [0, 96], sizes = [8, 32], strides = [1, 1]} : vector<8x128xf32> to vector<8x32xf32>
      %283 = arith.negf %282 : vector<8x32xf32>
      %284 = math.exp %283 : vector<8x32xf32>
      %cst_62 = arith.constant 1.000000e+00 : f32
      %285 = vector.broadcast %cst_62 : f32 to vector<8x32xf32>
      %286 = arith.addf %285, %284 : vector<8x32xf32>
      %287 = arith.divf %285, %286 : vector<8x32xf32>
      %288 = arith.mulf %279, %261 : vector<8x32xf32>
      %289 = arith.mulf %273, %281 : vector<8x32xf32>
      %290 = arith.addf %288, %289 : vector<8x32xf32>
      %291 = math.tanh %290 : vector<8x32xf32>
      %292 = arith.mulf %287, %291 : vector<8x32xf32>
      %293 = arith.addi %0, %c6_i32 : i32
      %294 = vector.broadcast %293 : i32 to vector<8x1xi32>
      %295 = arith.cmpi slt, %294, %19 : vector<8x1xi32>
      %296 = vector.shape_cast %295 : vector<8x1xi1> to vector<8x1xi1>
      %297 = vector.broadcast %296 : vector<8x1xi1> to vector<8x32xi1>
      %298 = arith.select %297, %292, %258 : vector<8x32xi1>, vector<8x32xf32>
      %299 = vector.shape_cast %295 : vector<8x1xi1> to vector<8x1xi1>
      %300 = vector.broadcast %299 : vector<8x1xi1> to vector<8x32xi1>
      %301 = arith.select %300, %290, %261 : vector<8x32xi1>, vector<8x32xf32>
      %c7_i32 = arith.constant 7 : i32
      %c8_i32_63 = arith.constant 8 : i32
      %302 = arith.muli %c7_i32, %c8_i32_63 : i32
      %303 = tpu.assume_multiple %302, 8 : i32
      %304 = arith.index_cast %303 : i32 to index
      %c0_64 = arith.constant 0 : index
      %305 = vector.load %arg14[%304, %c0_64] : memref<64x128xf32, #tpu.memory_space<vmem>>, vector<8x128xf32>
      %cst_65 = arith.constant dense<0.000000e+00> : vector<8x128xf32>
      %306 = tpu.matmul %298, %18, %cst_65 {dimension_numbers = #tpu.dot_dimension_numbers<[1], [0], [0], [1], [0, 0, 1, 1], [], []>} : vector<8x32xf32>, vector<32x128xf32>, vector<8x128xf32> -> vector<8x128xf32>
      %307 = arith.addf %305, %306 : vector<8x128xf32>
      %308 = vector.extract_strided_slice %307 {offsets = [0, 0], sizes = [8, 32], strides = [1, 1]} : vector<8x128xf32> to vector<8x32xf32>
      %309 = arith.negf %308 : vector<8x32xf32>
      %310 = math.exp %309 : vector<8x32xf32>
      %cst_66 = arith.constant 1.000000e+00 : f32
      %311 = vector.broadcast %cst_66 : f32 to vector<8x32xf32>
      %312 = arith.addf %311, %310 : vector<8x32xf32>
      %313 = arith.divf %311, %312 : vector<8x32xf32>
      %314 = vector.extract_strided_slice %307 {offsets = [0, 32], sizes = [8, 32], strides = [1, 1]} : vector<8x128xf32> to vector<8x32xf32>
      %315 = arith.negf %314 : vector<8x32xf32>
      %316 = math.exp %315 : vector<8x32xf32>
      %cst_67 = arith.constant 1.000000e+00 : f32
      %317 = vector.broadcast %cst_67 : f32 to vector<8x32xf32>
      %318 = arith.addf %317, %316 : vector<8x32xf32>
      %319 = arith.divf %317, %318 : vector<8x32xf32>
      %320 = vector.extract_strided_slice %307 {offsets = [0, 64], sizes = [8, 32], strides = [1, 1]} : vector<8x128xf32> to vector<8x32xf32>
      %321 = math.tanh %320 : vector<8x32xf32>
      %322 = vector.extract_strided_slice %307 {offsets = [0, 96], sizes = [8, 32], strides = [1, 1]} : vector<8x128xf32> to vector<8x32xf32>
      %323 = arith.negf %322 : vector<8x32xf32>
      %324 = math.exp %323 : vector<8x32xf32>
      %cst_68 = arith.constant 1.000000e+00 : f32
      %325 = vector.broadcast %cst_68 : f32 to vector<8x32xf32>
      %326 = arith.addf %325, %324 : vector<8x32xf32>
      %327 = arith.divf %325, %326 : vector<8x32xf32>
      %328 = arith.mulf %319, %301 : vector<8x32xf32>
      %329 = arith.mulf %313, %321 : vector<8x32xf32>
      %330 = arith.addf %328, %329 : vector<8x32xf32>
      %331 = math.tanh %330 : vector<8x32xf32>
      %332 = arith.mulf %327, %331 : vector<8x32xf32>
      %333 = arith.addi %0, %c7_i32 : i32
      %334 = vector.broadcast %333 : i32 to vector<8x1xi32>
      %335 = arith.cmpi slt, %334, %19 : vector<8x1xi32>
      %336 = vector.shape_cast %335 : vector<8x1xi1> to vector<8x1xi1>
      %337 = vector.broadcast %336 : vector<8x1xi1> to vector<8x32xi1>
      %338 = arith.select %337, %332, %298 : vector<8x32xi1>, vector<8x32xf32>
      %339 = vector.shape_cast %335 : vector<8x1xi1> to vector<8x1xi1>
      %340 = vector.broadcast %339 : vector<8x1xi1> to vector<8x32xi1>
      %341 = arith.select %340, %330, %301 : vector<8x32xi1>, vector<8x32xf32>
      %c8_i32_69 = arith.constant 8 : i32
      %c0_70 = arith.constant 0 : index
      %c0_71 = arith.constant 0 : index
      %342 = vector.load %arg12[%c0_70, %c0_71] : memref<8x32xf32, #tpu.memory_space<vmem>>, vector<8x32xf32>
      tpu.vector_store %arg12[%c0_70, %c0_71], %338 {strides = array<i32>} : memref<8x32xf32, #tpu.memory_space<vmem>>, vector<8x32xf32>,
      %c0_72 = arith.constant 0 : index
      %c0_73 = arith.constant 0 : index
      %343 = vector.load %arg13[%c0_72, %c0_73] : memref<8x32xf32, #tpu.memory_space<vmem>>, vector<8x32xf32>
      tpu.vector_store %arg13[%c0_72, %c0_73], %341 {strides = array<i32>} : memref<8x32xf32, #tpu.memory_space<vmem>>, vector<8x32xf32>,
    } else {
    }
    %c1_i32 = arith.constant 1 : i32
    %8 = arith.cmpi eq, %arg0, %c1_i32 : i32
    %9 = arith.extui %8 : i1 to i32
    %c0_i32_2 = arith.constant 0 : i32
    %10 = arith.cmpi ne, %9, %c0_i32_2 : i32
    scf.if %10 {
      %c0_3 = arith.constant 0 : index
      %c0_4 = arith.constant 0 : index
      %11 = vector.load %arg12[%c0_3, %c0_4] : memref<8x32xf32, #tpu.memory_space<vmem>>, vector<8x32xf32>
      %c0_5 = arith.constant 0 : index
      %c0_6 = arith.constant 0 : index
      %12 = vector.load %arg7[%c0_5, %c0_6] : memref<32x32xf32, #tpu.memory_space<vmem>>, vector<32x32xf32>
      %cst = arith.constant dense<0.000000e+00> : vector<8x32xf32>
      %13 = tpu.matmul %11, %12, %cst {dimension_numbers = #tpu.dot_dimension_numbers<[1], [0], [0], [1], [0, 0, 1, 1], [], []>} : vector<8x32xf32>, vector<32x32xf32>, vector<8x32xf32> -> vector<8x32xf32>
      %c0_7 = arith.constant 0 : index
      %c0_8 = arith.constant 0 : index
      %14 = vector.load %arg8[%c0_7, %c0_8] : memref<1x32xf32, #tpu.memory_space<vmem>>, vector<1x32xf32>
      %15 = vector.broadcast %14 : vector<1x32xf32> to vector<8x32xf32>
      %16 = arith.addf %13, %15 : vector<8x32xf32>
      %17 = math.tanh %16 : vector<8x32xf32>
      %c0_9 = arith.constant 0 : index
      %c0_10 = arith.constant 0 : index
      %18 = vector.load %arg9[%c0_9, %c0_10] : memref<32x4xf32, #tpu.memory_space<vmem>>, vector<32x4xf32>
      %cst_11 = arith.constant dense<0.000000e+00> : vector<8x4xf32>
      %19 = tpu.matmul %17, %18, %cst_11 {dimension_numbers = #tpu.dot_dimension_numbers<[1], [0], [0], [1], [0, 0, 1, 1], [], []>} : vector<8x32xf32>, vector<32x4xf32>, vector<8x4xf32> -> vector<8x4xf32>
      %c0_12 = arith.constant 0 : index
      %c0_13 = arith.constant 0 : index
      %20 = vector.load %arg10[%c0_12, %c0_13] : memref<1x4xf32, #tpu.memory_space<vmem>>, vector<1x4xf32>
      %21 = vector.broadcast %20 : vector<1x4xf32> to vector<8x4xf32>
      %22 = arith.addf %19, %21 : vector<8x4xf32>
      %c0_14 = arith.constant 0 : index
      %c0_15 = arith.constant 0 : index
      %23 = vector.load %arg11[%c0_14, %c0_15] : memref<8x4xf32, #tpu.memory_space<vmem>>, vector<8x4xf32>
      tpu.vector_store %arg11[%c0_14, %c0_15], %22 {strides = array<i32>} : memref<8x4xf32, #tpu.memory_space<vmem>>, vector<8x4xf32>,
    } else {
    }
    return
  }
  func.func @transform_0(%arg0: i32, %arg1: memref<1xi32, #tpu.memory_space<smem>>) -> (i32, i32) {
    %c0_i32 = arith.constant 0 : i32
    %c0_i32_0 = arith.constant 0 : i32
    %c0_i32_1 = arith.constant 0 : i32
    return %c0_i32, %c0_i32_0 : i32, i32
  }
  func.func @transform_1(%arg0: i32, %arg1: memref<1xi32, #tpu.memory_space<smem>>) -> (i32, i32) {
    %c0_i32 = arith.constant 0 : i32
    %c0_i32_0 = arith.constant 0 : i32
    return %arg0, %c0_i32 : i32, i32
  }
  func.func @transform_2(%arg0: i32, %arg1: memref<1xi32, #tpu.memory_space<smem>>) -> (i32, i32) {
    %c0_i32 = arith.constant 0 : i32
    %c0_i32_0 = arith.constant 0 : i32
    %c0_i32_1 = arith.constant 0 : i32
    return %c0_i32, %c0_i32_0 : i32, i32
  }
  func.func @transform_3(%arg0: i32, %arg1: memref<1xi32, #tpu.memory_space<smem>>) -> (i32, i32) {
    %c0_i32 = arith.constant 0 : i32
    %c0_i32_0 = arith.constant 0 : i32
    %c0_i32_1 = arith.constant 0 : i32
    return %c0_i32, %c0_i32_0 : i32, i32
  }
  func.func @transform_4(%arg0: i32, %arg1: memref<1xi32, #tpu.memory_space<smem>>) -> (i32, i32) {
    %c0_i32 = arith.constant 0 : i32
    %c0_i32_0 = arith.constant 0 : i32
    %c0_i32_1 = arith.constant 0 : i32
    return %c0_i32, %c0_i32_0 : i32, i32
  }
  func.func @transform_5(%arg0: i32, %arg1: memref<1xi32, #tpu.memory_space<smem>>) -> (i32, i32) {
    %c0_i32 = arith.constant 0 : i32
    %c0_i32_0 = arith.constant 0 : i32
    %c0_i32_1 = arith.constant 0 : i32
    return %c0_i32, %c0_i32_0 : i32, i32
  }
  func.func @transform_6(%arg0: i32, %arg1: memref<1xi32, #tpu.memory_space<smem>>) -> (i32, i32) {
    %c0_i32 = arith.constant 0 : i32
    %c0_i32_0 = arith.constant 0 : i32
    %c0_i32_1 = arith.constant 0 : i32
    return %c0_i32, %c0_i32_0 : i32, i32
  }
  func.func @transform_7(%arg0: i32, %arg1: memref<1xi32, #tpu.memory_space<smem>>) -> (i32, i32) {
    %c0_i32 = arith.constant 0 : i32
    %c0_i32_0 = arith.constant 0 : i32
    %c0_i32_1 = arith.constant 0 : i32
    return %c0_i32, %c0_i32_0 : i32, i32
  }
  func.func @transform_8(%arg0: i32, %arg1: memref<1xi32, #tpu.memory_space<smem>>) -> (i32, i32) {
    %c0_i32 = arith.constant 0 : i32
    %c0_i32_0 = arith.constant 0 : i32
    %c0_i32_1 = arith.constant 0 : i32
    return %c0_i32, %c0_i32_0 : i32, i32
  }
  func.func @transform_9(%arg0: i32, %arg1: memref<1xi32, #tpu.memory_space<smem>>) -> (i32, i32) {
    %c0_i32 = arith.constant 0 : i32
    %c0_i32_0 = arith.constant 0 : i32
    %c0_i32_1 = arith.constant 0 : i32
    return %c0_i32, %c0_i32_0 : i32, i32
  }
}

</mosaic_0001>

<bundles_post_ra>
// kernel: tpu_custom_call.1
= control target key start
LH: loop header
LB: loop body
LE: loop exit
PB: predicated region body
PF: predicated region fallthrough
CT: control target
= control target key end

     0   :  { %s2067_s15 = smov 0   ;;  %s2329_s0 = inlined_call_operand.<no memory space> [shape: s32[1], index: 0, kind: input, shape index: {}]   ;;  %s2330_s1 = inlined_call_operand.vmem [shape: s32[8,1], index: 1, kind: input, shape index: {}]   ;;  %s2331_s2 = inlined_call_operand.vmem [shape: f32[128,16], index: 2, kind: input, shape index: {}]   ;;  %s2332_s3 = inlined_call_operand.vmem [shape: f32[16,128], index: 3, kind: input, shape index: {}]   ;;  %s2333_s4 = inlined_call_operand.vmem [shape: f32[1,128], index: 4, kind: input, shape index: {}]   ;;  %s2334_s5 = inlined_call_operand.vmem [shape: f32[32,128], index: 5, kind: input, shape index: {}]   ;;  %s2335_s6 = inlined_call_operand.vmem [shape: f32[32,32], index: 6, kind: input, shape index: {}]   ;;  %s2336_s7 = inlined_call_operand.vmem [shape: f32[1,32], index: 7, kind: input, shape index: {}]   ;;  %s2337_s8 = inlined_call_operand.vmem [shape: f32[32,4], index: 8, kind: input, shape index: {}]   ;;  %s2338_s9 = inlined_call_operand.vmem [shape: f32[1,4], index: 9, kind: input, shape index: {}]   ;;  %s2339_s10 = inlined_call_operand.vmem [shape: f32[8,4], index: 10, kind: output, shape index: {}]  }
   0x1   :  { %15 = sst [smem:[#allocation6]] %s2329_s0 }
   0x2 LB: > { %s2073_s16 = sadd.s32 4294967295, %s1996_s15   ;;  %p1615_p0 = scmp.ge.s32.totalorder %s1996_s15, 1  ;;  %s1996_s15 = sphi %s2067_s15, %s21_s15  }
   0x3   : > { %p285_p1 = scmp.lt.s32.totalorder %s1996_s15, 3 }
   0x5   : > { %p286_p2 = pnand %p1615_p0, %p285_p1 }
   0x6   : > { %s2078_s17 = sshll.u32 (!%p286_p2), %s2073_s16, 3  ;;  %p1619_p4 = scmp.ne.s32.totalorder (!%p286_p2), %s2073_s16, 0 }
   0x7   : > { %289 = sbr.rel (%p286_p2) target bundleno = 6116 (0x17e4), region = 56  ;;  %p317_p3 = scmp.lt.s32.totalorder (!%p286_p2), %s2078_s17, 15 }
   0xe   : > { %s318_s0 = scalar_select %p317_p3, %s2078_s17, 15 }
   0xf   : > { %326 = sbr.rel (%p1619_p4) target bundleno = 22 (0x16), region = 60  ;;  %vm327_vm0 = vcmask (!%p1619_p4), 261120   ;;  %v1998_v0 = vmov (!%p1619_p4), 0.0  }
  0x10   : > { %s1617_s18 = sshll.u32 %s318_s0, 3  ;;  %328 = vst.msk [vmem:[#allocation2] sm:$0xff] (!%p1619_p4), %vm327_vm0, %v1998_v0  ;;  %329 = vst.msk [vmem:[#allocation3] sm:$0xff] (!%p1619_p4), %vm327_vm0, %v1998_v0 }
  0x11   : > { %s2085_s21 = scalar_lea.vmem %s2331_s2, %s1617_s18 }
  0x16 PF: > { %s330_s22 = sld [smem:[#allocation6]] }
  0x1c   : > { %p1620_p5 = scmp.ge.s32.totalorder %s2078_s17, %s330_s22 }
  0x1d   : > { %v343_v1 = vld [vmem:[%s2332_s3] sm:$0xff] (!%p1620_p5)  ;;  %v344_v2 = vld [vmem:[%s2332_s3 + $0x8] sm:$0xff] (!%p1620_p5)  ;;  %vm352_vm1 = vcmask (!%p1620_p5), 130048   ;;  %v1999_v4 = vmov (!%p1620_p5), 0.0|0.0   ;;  %v492_v9 = vld [vmem:[%s2334_s5 + $0x10] sm:$0xff] (!%p1620_p5)  ;;  %vm2000_vm2 = vmmov (!%p1620_p5), 0   ;;  %v601_v29 = vstv (!%p1620_p5), %s2078_s17 }
  0x1e   : > { %334 = sbr.rel (%p1620_p5) target bundleno = 5665 (0x1621), region = 64  ;;  %v490_v3 = vld [vmem:[%s2334_s5] sm:$0xff] (!%p1620_p5)  ;;  %1843 = vmatprep.subr.bf16.mxu1 (!%p1620_p5), %v1999_v4  ;;  %v1839_v5 = vpack.c.bf16 (!%p1620_p5), %v344_v2, %v343_v1  ;;  %v491_v6 = vld [vmem:[%s2334_s5 + $0x8] sm:$0xff] (!%p1620_p5)  ;;  %v493_v10 = vld [vmem:[%s2334_s5 + $0x18] sm:$0xff] (!%p1620_p5)  ;;  %v2001_v11 = vmov (!%p1620_p5), 0.0   ;;  %vm498_vm3 = vcmask (!%p1620_p5), 261120  }
  0x1f   : > { %v335_v7 = vld [vmem:[%s2085_s21] sm:$0xff] (!%p1620_p5)  ;;  %v2103_v8 = vpack.c.bf16 (!%p1620_p5), %v491_v6, %v490_v3  ;;  %1737 = vmatprep.mubr.msk.f32.mxu1 (!%p1620_p5), %vm2000_vm2, %v2001_v11  ;;  %v336_v12 = vld [vmem:[%s2085_s21 + $0x8] sm:$0xff] (!%p1620_p5)  ;;  %v2116_v13 = vpack.c.bf16 (!%p1620_p5), %v493_v10, %v492_v9  ;;  %v2002_v22 = vmov (!%p1620_p5), 0   ;;  %s2003_s19 = smov (!%p1620_p5), 64   ;;  %s2004_s20 = smov (!%p1620_p5), 32   ;;  %v337_v62 = vld [vmem:[%s2085_s21 + $0x10] sm:$0xff] (!%p1620_p5) }
  0x20   : > { %1717 = vmatprep.mubr.msk.f32.mxu0 (!%p1620_p5), %vm352_vm1, %v335_v7  ;;  %1840 = vmatprep.subr.bf16.mxu0 (!%p1620_p5), %v1839_v5  ;;  %v495_v14 = vld [vmem:[#allocation2] sm:$0xff] (!%p1620_p5)  ;;  %v496_v24 = vld [vmem:[#allocation3] sm:$0xff] (!%p1620_p5)  ;;  %s2005_s24 = smov (!%p1620_p5), 96   ;;  %s715_s25 = sadd.s32 (!%p1620_p5), 1, %s2078_s17  ;;  %v338_v63 = vld [vmem:[%s2085_s21 + $0x18] sm:$0xff] (!%p1620_p5) }
  0x21   : > { %1845 = vmatpush3.bf16.msra.mxu1 (!%p1620_p5), %v2103_v8  ;;  %1842 = vmatpush3.bf16.msra.mxu0 (!%p1620_p5), %v1839_v5  ;;  %v2137_v15 = vld [vmem:[%s2333_s4] ss:$0 sm:$0xff] (!%p1620_p5)  ;;  %v716_v49 = vstv (!%p1620_p5), %s715_s25  ;;  %v340_v1 = vld [vmem:[%s2085_s21 + $0x28] sm:$0xff] (!%p1620_p5)  ;;  %v341_v2 = vld [vmem:[%s2085_s21 + $0x30] sm:$0xff] (!%p1620_p5)  ;;  %s939_s26 = sadd.s32 (!%p1620_p5), 3, %s2078_s17  ;;  %s1051_s27 = sadd.s32 (!%p1620_p5), 4, %s2078_s17 }
  0x22   : > { %1846 = vmatprep.subr.bf16.mxu1 (!%p1620_p5), %v1999_v4  ;;  %1855 = vmatprep.subr.bf16.mxu0 (!%p1620_p5), %v1999_v4  ;;  %v2147_v28 = vld [vmem:[%s2330_s1] sm:$0xff] (!%p1620_p5)  ;;  %v342_v3 = vld [vmem:[%s2085_s21 + $0x38] sm:$0xff] (!%p1620_p5)  ;;  %s1163_s28 = sadd.s32 (!%p1620_p5), 5, %s2078_s17  ;;  %s1275_s29 = sadd.s32 (!%p1620_p5), 6, %s2078_s17 }
  0x23   : > { %1922 = vset.pattern.permute.xlu1 (!%p1620_p5), %v2002_v22  ;;  %1923 = vset.pattern.permute.xlu0 (!%p1620_p5), %v2002_v22  ;;  %vm602_vm4 = vcmp.lt.s32.totalorder (!%p1620_p5), %v601_v29, %v2147_v28  ;;  %vm717_vm6 = vcmp.lt.s32.totalorder (!%p1620_p5), %v716_v49, %v2147_v28  ;;  %v339_v0 = vld [vmem:[%s2085_s21 + $0x20] sm:$0xff] (!%p1620_p5)  ;;  %s827_s21 = sadd.s32 (!%p1620_p5), 2, %s2078_s17  ;;  %s1387_s30 = sadd.s32 (!%p1620_p5), 7, %s2078_s17 }
  0x24   : > { %1718 = vmatmul.mubr.msk.f32.vlgmr.msra.gmra.mrb[0].mxu0 (!%p1620_p5), %vm352_vm1, %v336_v12  ;;  %v603_v33 = vsel (!%p1620_p5), %vm602_vm4, 1, %v2002_v22  ;;  %v718_v51 = vsel (!%p1620_p5), %vm717_vm6, 1, %v2002_v22 }
  0x25   : > { %1848 = vmatpush3.bf16.msra.mxu1 %v2116_v13  ;;  %1857 = vmatpush3.bf16.msra.mxu0 %v2103_v8 }
  0x26   : > { %1849 = vmatprep.subr.bf16.mxu1 %v1999_v4  ;;  %1858 = vmatprep.subr.bf16.mxu0 %v1999_v4 }
  0x27   : > { %1720 = vmatprep.mubr.msk.f32.mxu0 %vm352_vm1, %v337_v62 }
  0x28   : > { %1738 = vmatmul.mubr.msk.f32.vlgmr.msra.gmra.mrb[0].mxu1 %vm498_vm3, %v495_v14  ;;  %1721 = vmatmul.mubr.msk.f32.gmra.mrb[2].mxu0 %vm352_vm1, %v338_v63 }
  0x29   : > { %1851 = vmatpush3.bf16.msra.mxu1 %v2103_v8  ;;  %1748 = vmatprep.mubr.msk.f32.mxu1 %vm2000_vm2, %v2001_v11 }
  0x2a   : > { %1852 = vmatprep.subr.bf16.mxu1 %v1999_v4  ;;  %1860 = vmatpush3.bf16.msra.mxu0 %v2116_v13 }
  0x2b   : > { %1867 = vmatprep.subr.bf16.mxu0 %v1999_v4  ;;  %1723 = vmatprep.mubr.msk.f32.mxu0 %vm352_vm1, %v339_v0 }
  0x2c   : > { %1724 = vmatmul.mubr.msk.f32.gmra.mrb[4].mxu0 %vm352_vm1, %v340_v1 }
  0x2d   : > { %1854 = vmatpush3.bf16.msra.mxu1 %v2116_v13  ;;  %1726 = vmatprep.mubr.msk.f32.mxu0 %vm352_vm1, %v341_v2 }
  0x2e   : > { %1861 = vmatprep.subr.bf16.mxu1 %v1999_v4 }
  0x30   : > { %1727 = vmatmul.mubr.msk.f32.gmra.mrb[6].mxu0 %vm352_vm1, %v342_v3 }
  0x31   : > { %1759 = vmatprep.mubr.msk.f32.mxu0 %vm2000_vm2, %v2001_v11 }
  0xf7   : > { %v1719_v16 = vpop.f32.mrb[0].mxu0 }
  0xf8   : > { %v443_v17 = vpop.f32.mrb[1].mxu0  ;;  %v449_v45 = vadd.f32 %v1719_v16, %v2137_v15 }
  0xf9   : > { %v444_v18 = vadd.f32 %v2137_v15, %v443_v17 }
  0xfb   : > { %v568_v19 = vpop.f32.mrb[0].mxu1  ;;  %v1722_v12 = vpop.f32.mrb[2].mxu0 }
  0xfc   : > { %v572_v20 = vadd.f32 %v568_v19, %v444_v18  ;;  %v1739_v21 = vpop.f32.mrb[1].mxu1 }
  0xfe   : > { %1924 = vtanh.f32 %v572_v20  ;;  %v1631_v25 = vmul.f32 -1.442695, %v572_v20 }
 0x100   : > { %1926 = vpow2.f32 %v1631_v25 }
 0x108   : > { %v1925_v23 = vpop.eup %1924 }
 0x109   : > { %586 = vrot.lane.b32.xlu0 %v1925_v23, %s2003_s19 }
 0x10a   : > { %v1927_v26 = vpop.eup %1926 }
 0x10b   : > { %v576_v27 = vadd.f32 1.0, %v1927_v26  ;;  %v828_v26 = vstv %s827_s21 }
 0x10c   : > { %vm829_vm8 = vcmp.lt.s32.totalorder %v828_v26, %v2147_v28 }
 0x10d   : > { %581 = vrot.lane.b32.xlu0 %v496_v24, %s2004_s20  ;;  %1928 = vrcp.f32 %v576_v27  ;;  %v830_v29 = vsel %vm829_vm8, 1, %v2002_v22 }
 0x117   : > { %v1929_v30 = vpop.eup %1928 }
 0x17b   : > { %v587_v31 = vpop.permute.xlu0 %586 }
 0x17c   : > { %v589_v32 = vmul.f32 %v1929_v30, %v587_v31 }
 0x17e   : > { %591 = vrot.lane.b32.xlu1 %v589_v32, %s2004_s20 }
 0x17f   : > { %v582_v34 = vpop.permute.xlu0 %581 }
 0x180   : > { %v584_v35 = vmul.f32 %v1929_v30, %v582_v34 }
 0x182   : > { %605 = vperm.xlu1 %1922, %v603_v33  }
 0x186   : > { %608 = vrot.lane.b32.xlu1 %v495_v14, %s2005_s24  ;;  %v453_v14 = vpop.f32.mrb[3].mxu0 }
 0x187   : > { %v2188_v16 = vpop.f32.mrb[4].mxu0  ;;  %v454_v21 = vadd.f32 %v2137_v15, %v453_v14 }
 0x188   : > { %v2190_v17 = vpop.f32.mrb[5].mxu0 }
 0x189   : > { %v2192_v18 = vpop.f32.mrb[6].mxu0 }
 0x18a   : > { %v2194_v19 = vpop.f32.mrb[7].mxu0 }
 0x1f0   : > { %v592_v36 = vpop.permute.xlu1 %591 }
 0x1f1   : > { %v594_v37 = vadd.f32 %v592_v36, %v584_v35 }
 0x1f3   : > { %1930 = vtanh.f32 %v594_v37 }
 0x1fd   : > { %v1931_v38 = vpop.eup %1930 }
 0x1fe   : > { %597 = vrot.lane.b32.xlu0 %v1931_v38, %s2003_s19 }
 0x201   : > { %v606_v39 = vpop.permute.xlu1 %605 }
 0x202   : > { %vm607_vm5 = vcmp.eq.s32.totalorder %v606_v39, 1 }
 0x203   : > { %v612_v58 = vsel %vm607_vm5, %v594_v37, %v582_v34 }
 0x205   : > { %v609_v41 = vpop.permute.xlu1 %608 }
 0x270   : > { %v598_v40 = vpop.permute.xlu0 %597 }
 0x271   : > { %v600_v42 = vmul.f32 %v1929_v30, %v598_v40 }
 0x273   : > { %v611_v43 = vsel %vm607_vm5, %v600_v42, %v609_v41 }
 0x274   : > { %616 = vrot.lane.b32.xlu0 %v611_v43, %s2004_s20 }
 0x2e6   : > { %v617_v44 = vpop.permute.xlu0 %616 }
 0x2e7   : > { %1749 = vmatmul.mubr.msk.f32.vlgmr.msra.gmra.mrb[2].mxu1 %vm498_vm3, %v617_v44 }
 0x2e8   : > { %1863 = vmatpush3.bf16.msra.mxu1 %v2103_v8  ;;  %1770 = vmatprep.mubr.msk.f32.mxu1 %vm2000_vm2, %v2001_v11 }
 0x2e9   : > { %1864 = vmatprep.subr.bf16.mxu1 %v1999_v4 }
 0x2ec   : > { %1866 = vmatpush3.bf16.msra.mxu1 %v2116_v13 }
 0x2ed   : > { %1873 = vmatprep.subr.bf16.mxu1 %v1999_v4 }
 0x3ba   : > { %v686_v46 = vpop.f32.mrb[2].mxu1 }
 0x3bb   : > { %v690_v47 = vadd.f32 %v686_v46, %v449_v45  ;;  %v1750_v48 = vpop.f32.mrb[3].mxu1  ;;  %v459_v46 = vadd.f32 %v1722_v12, %v2137_v15  ;;  %v1052_v12 = vstv %s1051_s27 }
 0x3bc   : > { %vm1053_vm12 = vcmp.lt.s32.totalorder %v1052_v12, %v2147_v28 }
 0x3bd   : > { %1932 = vtanh.f32 %v690_v47  ;;  %v1633_v52 = vmul.f32 -1.442695, %v690_v47 }
 0x3bf   : > { %1934 = vpow2.f32 %v1633_v52 }
 0x3c7   : > { %v1933_v50 = vpop.eup %1932 }
 0x3c8   : > { %700 = vrot.lane.b32.xlu1 %v1933_v50, %s2003_s19  ;;  %v940_v50 = vstv %s939_s26 }
 0x3c9   : > { %v1935_v53 = vpop.eup %1934  ;;  %vm941_vm10 = vcmp.lt.s32.totalorder %v940_v50, %v2147_v28 }
 0x3ca   : > { %v694_v54 = vadd.f32 1.0, %v1935_v53  ;;  %v942_v52 = vsel %vm941_vm10, 1, %v2002_v22 }
 0x3cc   : > { %720 = vperm.xlu1 %1922, %v718_v51   ;;  %1936 = vrcp.f32 %v694_v54 }
 0x3d6   : > { %v1937_v55 = vpop.eup %1936 }
 0x3d7   : > { %v698_v59 = vmul.f32 %v1937_v55, %v612_v58 }
 0x43a   : > { %v701_v56 = vpop.permute.xlu1 %700 }
 0x43b   : > { %v703_v57 = vmul.f32 %v1937_v55, %v701_v56 }
 0x43d   : > { %705 = vrot.lane.b32.xlu0 %v703_v57, %s2004_s20 }
 0x44b   : > { %v721_v6 = vpop.permute.xlu1 %720 }
 0x44c   : > { %vm722_vm7 = vcmp.eq.s32.totalorder %v721_v6, 1  ;;  %v464_v6 = vadd.f32 %v2137_v15, %v2190_v17 }
 0x4af   : > { %v706_v60 = vpop.permute.xlu0 %705 }
 0x4b0   : > { %v708_v61 = vadd.f32 %v706_v60, %v698_v59 }
 0x4b2   : > { %1938 = vtanh.f32 %v708_v61  ;;  %v724_v36 = vsel %vm722_vm7, %v708_v61, %v612_v58 }
 0x4bc   : > { %v1939_v5 = vpop.eup %1938 }
 0x4bd   : > { %711 = vrot.lane.b32.xlu0 %v1939_v5, %s2003_s19 }
 0x52f   : > { %v712_v7 = vpop.permute.xlu0 %711 }
 0x530   : > { %v714_v9 = vmul.f32 %v1937_v55, %v712_v7 }
 0x532   : > { %v723_v10 = vsel %vm722_vm7, %v714_v9, %v611_v43 }
 0x533   : > { %728 = vrot.lane.b32.xlu1 %v723_v10, %s2004_s20 }
 0x5a5   : > { %v729_v20 = vpop.permute.xlu1 %728 }
 0x5a6   : > { %1760 = vmatmul.mubr.msk.f32.vlgmr.msra.gmra.mrb[8].mxu0 %vm498_vm3, %v729_v20  ;;  %v1054_v20 = vsel %vm1053_vm12, 1, %v2002_v22 }
 0x5a7   : > { %1869 = vmatpush3.bf16.msra.mxu0 %v2103_v8  ;;  %1781 = vmatprep.mubr.msk.f32.mxu0 %vm2000_vm2, %v2001_v11 }
 0x5a8   : > { %1870 = vmatprep.subr.bf16.mxu0 %v1999_v4 }
 0x5ab   : > { %1872 = vmatpush3.bf16.msra.mxu0 %v2116_v13 }
 0x5ac   : > { %1879 = vmatprep.subr.bf16.mxu0 %v1999_v4 }
 0x679   : > { %v798_v23 = vpop.f32.mrb[8].mxu0 }
 0x67a   : > { %v802_v24 = vadd.f32 %v798_v23, %v454_v21  ;;  %v1761_v25 = vpop.f32.mrb[9].mxu0 }
 0x67c   : > { %1940 = vtanh.f32 %v802_v24  ;;  %v1635_v30 = vmul.f32 -1.442695, %v802_v24 }
 0x67e   : > { %1942 = vpow2.f32 %v1635_v30 }
 0x686   : > { %v1941_v27 = vpop.eup %1940 }
 0x687   : > { %812 = vrot.lane.b32.xlu0 %v1941_v27, %s2003_s19 }
 0x688   : > { %v1943_v31 = vpop.eup %1942 }
 0x689   : > { %v806_v32 = vadd.f32 1.0, %v1943_v31 }
 0x68b   : > { %832 = vperm.xlu0 %1923, %v830_v29   ;;  %1944 = vrcp.f32 %v806_v32 }
 0x695   : > { %v1945_v33 = vpop.eup %1944 }
 0x696   : > { %v810_v37 = vmul.f32 %v1945_v33, %v724_v36 }
 0x6f9   : > { %v813_v34 = vpop.permute.xlu0 %812 }
 0x6fa   : > { %v815_v35 = vmul.f32 %v1945_v33, %v813_v34 }
 0x6fc   : > { %817 = vrot.lane.b32.xlu1 %v815_v35, %s2004_s20 }
 0x70a   : > { %v833_v41 = vpop.permute.xlu0 %832 }
 0x70b   : > { %vm834_vm9 = vcmp.eq.s32.totalorder %v833_v41, 1 }
 0x76e   : > { %v818_v38 = vpop.permute.xlu1 %817 }
 0x76f   : > { %v820_v39 = vadd.f32 %v818_v38, %v810_v37  ;;  %v469_v38 = vadd.f32 %v2188_v16, %v2137_v15 }
 0x771   : > { %1946 = vtanh.f32 %v820_v39  ;;  %v836_v59 = vsel %vm834_vm9, %v820_v39, %v724_v36 }
 0x77b   : > { %v1947_v40 = vpop.eup %1946 }
 0x77c   : > { %823 = vrot.lane.b32.xlu1 %v1947_v40, %s2003_s19 }
 0x7ee   : > { %v824_v42 = vpop.permute.xlu1 %823 }
 0x7ef   : > { %v826_v43 = vmul.f32 %v1945_v33, %v824_v42  ;;  %v1164_v42 = vstv %s1163_s28 }
 0x7f0   : > { %vm1165_vm14 = vcmp.lt.s32.totalorder %v1164_v42, %v2147_v28 }
 0x7f1   : > { %v835_v44 = vsel %vm834_vm9, %v826_v43, %v723_v10 }
 0x7f2   : > { %840 = vrot.lane.b32.xlu1 %v835_v44, %s2004_s20 }
 0x864   : > { %v841_v45 = vpop.permute.xlu1 %840 }
 0x865   : > { %1771 = vmatmul.mubr.msk.f32.vlgmr.msra.gmra.mrb[4].mxu1 %vm498_vm3, %v841_v45 }
 0x866   : > { %1875 = vmatpush3.bf16.msra.mxu1 %v2103_v8  ;;  %1792 = vmatprep.mubr.msk.f32.mxu1 %vm2000_vm2, %v2001_v11 }
 0x867   : > { %1876 = vmatprep.subr.bf16.mxu1 %v1999_v4 }
 0x86a   : > { %1878 = vmatpush3.bf16.msra.mxu1 %v2116_v13 }
 0x86b   : > { %1885 = vmatprep.subr.bf16.mxu1 %v1999_v4 }
 0x938   : > { %v910_v47 = vpop.f32.mrb[4].mxu1 }
 0x939   : > { %v914_v48 = vadd.f32 %v910_v47, %v459_v46  ;;  %v1772_v49 = vpop.f32.mrb[5].mxu1 }
 0x93b   : > { %1948 = vtanh.f32 %v914_v48  ;;  %v1637_v53 = vmul.f32 -1.442695, %v914_v48 }
 0x93d   : > { %1950 = vpow2.f32 %v1637_v53 }
 0x945   : > { %v1949_v51 = vpop.eup %1948 }
 0x946   : > { %924 = vrot.lane.b32.xlu0 %v1949_v51, %s2003_s19 }
 0x947   : > { %v1951_v54 = vpop.eup %1950 }
 0x948   : > { %v918_v55 = vadd.f32 1.0, %v1951_v54 }
 0x94a   : > { %944 = vperm.xlu0 %1923, %v942_v52   ;;  %1952 = vrcp.f32 %v918_v55 }
 0x954   : > { %v1953_v56 = vpop.eup %1952 }
 0x955   : > { %v922_v60 = vmul.f32 %v1953_v56, %v836_v59 }
 0x9b8   : > { %v925_v57 = vpop.permute.xlu0 %924 }
 0x9b9   : > { %v927_v58 = vmul.f32 %v1953_v56, %v925_v57 }
 0x9bb   : > { %929 = vrot.lane.b32.xlu1 %v927_v58, %s2004_s20 }
 0x9c9   : > { %v945_v0 = vpop.permute.xlu0 %944 }
 0x9ca   : > { %vm946_vm11 = vcmp.eq.s32.totalorder %v945_v0, 1 }
 0xa2d   : > { %v930_v61 = vpop.permute.xlu1 %929 }
 0xa2e   : > { %v932_v62 = vadd.f32 %v930_v61, %v922_v60  ;;  %v1276_v60 = vstv %s1275_s29 }
 0xa2f   : > { %vm1277_vm0 = vcmp.lt.s32.totalorder %v1276_v60, %v2147_v28 }
 0xa30   : > { %1954 = vtanh.f32 %v932_v62  ;;  %v948_v27 = vsel %vm946_vm11, %v932_v62, %v836_v59  ;;  %v1278_v62 = vsel %vm1277_vm0, 1, %v2002_v22 }
 0xa3a   : > { %v1955_v63 = vpop.eup %1954 }
 0xa3b   : > { %935 = vrot.lane.b32.xlu1 %v1955_v63, %s2003_s19 }
 0xaad   : > { %v936_v1 = vpop.permute.xlu1 %935 }
 0xaae   : > { %v938_v2 = vmul.f32 %v1953_v56, %v936_v1  ;;  %v474_v56 = vadd.f32 %v2137_v15, %v2194_v19 }
 0xab0   : > { %v947_v3 = vsel %vm946_vm11, %v938_v2, %v835_v44 }
 0xab1   : > { %952 = vrot.lane.b32.xlu0 %v947_v3, %s2004_s20 }
 0xb23   : > { %v953_v5 = vpop.permute.xlu0 %952 }
 0xb24   : > { %1782 = vmatmul.mubr.msk.f32.vlgmr.msra.gmra.mrb[10].mxu0 %vm498_vm3, %v953_v5 }
 0xb25   : > { %1881 = vmatpush3.bf16.msra.mxu0 %v2103_v8  ;;  %1803 = vmatprep.mubr.msk.f32.mxu0 %vm2000_vm2, %v2001_v11 }
 0xb26   : > { %1882 = vmatprep.subr.bf16.mxu0 %v1999_v4 }
 0xb29   : > { %1884 = vmatpush3.bf16.msra.mxu0 %v2116_v13 }
 0xbf7   : > { %v1022_v7 = vpop.f32.mrb[10].mxu0 }
 0xbf8   : > { %v1026_v9 = vadd.f32 %v1022_v7, %v464_v6  ;;  %v1783_v10 = vpop.f32.mrb[11].mxu0 }
 0xbfa   : > { %1956 = vtanh.f32 %v1026_v9  ;;  %v1639_v21 = vmul.f32 -1.442695, %v1026_v9 }
 0xbfc   : > { %1958 = vpow2.f32 %v1639_v21 }
 0xc04   : > { %v1957_v14 = vpop.eup %1956 }
 0xc05   : > { %1036 = vrot.lane.b32.xlu1 %v1957_v14, %s2003_s19 }
 0xc06   : > { %v1959_v23 = vpop.eup %1958 }
 0xc07   : > { %v1030_v24 = vadd.f32 1.0, %v1959_v23 }
 0xc09   : > { %1056 = vperm.xlu1 %1922, %v1054_v20   ;;  %1960 = vrcp.f32 %v1030_v24  ;;  %v479_v24 = vadd.f32 %v2192_v18, %v2137_v15 }
 0xc13   : > { %v1961_v17 = vpop.eup %1960 }
 0xc14   : > { %v1034_v29 = vmul.f32 %v1961_v17, %v948_v27 }
 0xc77   : > { %v1037_v25 = vpop.permute.xlu1 %1036 }
 0xc78   : > { %v1039_v26 = vmul.f32 %v1961_v17, %v1037_v25 }
 0xc7a   : > { %1041 = vrot.lane.b32.xlu0 %v1039_v26, %s2004_s20 }
 0xc88   : > { %v1057_v33 = vpop.permute.xlu1 %1056 }
 0xc89   : > { %vm1058_vm13 = vcmp.eq.s32.totalorder %v1057_v33, 1 }
 0xcec   : > { %v1042_v30 = vpop.permute.xlu0 %1041 }
 0xced   : > { %v1044_v31 = vadd.f32 %v1042_v30, %v1034_v29 }
 0xcef   : > { %1962 = vtanh.f32 %v1044_v31  ;;  %v1060_v46 = vsel %vm1058_vm13, %v1044_v31, %v948_v27  ;;  %v1388_v27 = vstv %s1387_s30 }
 0xcf9   : > { %v1963_v32 = vpop.eup %1962 }
 0xcfa   : > { %1047 = vrot.lane.b32.xlu0 %v1963_v32, %s2003_s19 }
 0xd6c   : > { %v1048_v34 = vpop.permute.xlu0 %1047 }
 0xd6d   : > { %v1050_v35 = vmul.f32 %v1961_v17, %v1048_v34 }
 0xd6f   : > { %v1059_v36 = vsel %vm1058_vm13, %v1050_v35, %v947_v3 }
 0xd70   : > { %1064 = vrot.lane.b32.xlu1 %v1059_v36, %s2004_s20 }
 0xde2   : > { %v1065_v37 = vpop.permute.xlu1 %1064 }
 0xde3   : > { %1793 = vmatmul.mubr.msk.f32.vlgmr.msra.gmra.mrb[6].mxu1 %vm498_vm3, %v1065_v37 }
 0xde4   : > { %1887 = vmatpush3.bf16.msra.mxu1 %v2103_v8  ;;  %1814 = vmatprep.mubr.msk.f32.mxu1 %vm2000_vm2, %v2001_v11  ;;  %v1166_v8 = vsel %vm1165_vm14, 1, %v2002_v22  ;;  %vm1389_vm2 = vcmp.lt.s32.totalorder %v1388_v27, %v2147_v28 }
 0xde5   : > { %1888 = vmatprep.subr.bf16.mxu1 %v1999_v4  ;;  %v1390_v30 = vsel %vm1389_vm2, 1, %v2002_v22 }
 0xde8   : > { %1890 = vmatpush3.bf16.msra.mxu1 %v2116_v13 }
 0xeb6   : > { %v1134_v39 = vpop.f32.mrb[6].mxu1 }
 0xeb7   : > { %v1138_v40 = vadd.f32 %v1134_v39, %v469_v38  ;;  %v1794_v41 = vpop.f32.mrb[7].mxu1 }
 0xeb9   : > { %1964 = vtanh.f32 %v1138_v40  ;;  %v1641_v4 = vmul.f32 -1.442695, %v1138_v40 }
 0xebb   : > { %1966 = vpow2.f32 %v1641_v4 }
 0xec3   : > { %v1965_v43 = vpop.eup %1964 }
 0xec4   : > { %1148 = vrot.lane.b32.xlu0 %v1965_v43, %s2003_s19 }
 0xec5   : > { %v1967_v11 = vpop.eup %1966 }
 0xec6   : > { %v1142_v13 = vadd.f32 1.0, %v1967_v11 }
 0xec8   : > { %1168 = vperm.xlu0 %1923, %v1166_v8   ;;  %1968 = vrcp.f32 %v1142_v13 }
 0xed2   : > { %v1969_v16 = vpop.eup %1968 }
 0xed3   : > { %v1146_v47 = vmul.f32 %v1969_v16, %v1060_v46 }
 0xf36   : > { %v1149_v44 = vpop.permute.xlu0 %1148 }
 0xf37   : > { %v1151_v45 = vmul.f32 %v1969_v16, %v1149_v44 }
 0xf39   : > { %1153 = vrot.lane.b32.xlu1 %v1151_v45, %s2004_s20 }
 0xf47   : > { %v1169_v51 = vpop.permute.xlu0 %1168 }
 0xf48   : > { %vm1170_vm15 = vcmp.eq.s32.totalorder %v1169_v51, 1 }
 0xfab   : > { %v1154_v48 = vpop.permute.xlu1 %1153 }
 0xfac   : > { %v1156_v49 = vadd.f32 %v1154_v48, %v1146_v47 }
 0xfae   : > { %1970 = vtanh.f32 %v1156_v49  ;;  %v1172_v5 = vsel %vm1170_vm15, %v1156_v49, %v1060_v46 }
 0xfb8   : > { %v1971_v50 = vpop.eup %1970 }
 0xfb9   : > { %1159 = vrot.lane.b32.xlu1 %v1971_v50, %s2003_s19 }
0x102b   : > { %v1160_v52 = vpop.permute.xlu1 %1159 }
0x102c   : > { %v1162_v53 = vmul.f32 %v1969_v16, %v1160_v52 }
0x102e   : > { %v1171_v54 = vsel %vm1170_vm15, %v1162_v53, %v1059_v36 }
0x102f   : > { %1176 = vrot.lane.b32.xlu0 %v1171_v54, %s2004_s20 }
0x10a1   : > { %v1177_v55 = vpop.permute.xlu0 %1176 }
0x10a2   : > { %1804 = vmatmul.mubr.msk.f32.vlgmr.msra.gmra.mrb[12].mxu0 %vm498_vm3, %v1177_v55 }
0x1175   : > { %v1246_v57 = vpop.f32.mrb[12].mxu0 }
0x1176   : > { %v1250_v58 = vadd.f32 %v1246_v57, %v474_v56  ;;  %v1805_v59 = vpop.f32.mrb[13].mxu0 }
0x1178   : > { %1972 = vtanh.f32 %v1250_v58  ;;  %v1643_v63 = vmul.f32 -1.442695, %v1250_v58 }
0x117a   : > { %1974 = vpow2.f32 %v1643_v63 }
0x1182   : > { %v1973_v61 = vpop.eup %1972 }
0x1183   : > { %1260 = vrot.lane.b32.xlu1 %v1973_v61, %s2003_s19 }
0x1184   : > { %v1975_v0 = vpop.eup %1974 }
0x1185   : > { %v1254_v1 = vadd.f32 1.0, %v1975_v0 }
0x1187   : > { %1280 = vperm.xlu1 %1922, %v1278_v62   ;;  %1976 = vrcp.f32 %v1254_v1 }
0x1191   : > { %v1977_v19 = vpop.eup %1976 }
0x1192   : > { %v1258_v6 = vmul.f32 %v1977_v19, %v1172_v5 }
0x11f5   : > { %v1261_v2 = vpop.permute.xlu1 %1260 }
0x11f6   : > { %v1263_v3 = vmul.f32 %v1977_v19, %v1261_v2 }
0x11f8   : > { %1265 = vrot.lane.b32.xlu0 %v1263_v3, %s2004_s20 }
0x1206   : > { %v1281_v12 = vpop.permute.xlu1 %1280 }
0x1207   : > { %vm1282_vm1 = vcmp.eq.s32.totalorder %v1281_v12, 1 }
0x126a   : > { %v1266_v7 = vpop.permute.xlu0 %1265 }
0x126b   : > { %v1268_v9 = vadd.f32 %v1266_v7, %v1258_v6 }
0x126d   : > { %1978 = vtanh.f32 %v1268_v9  ;;  %v1284_v35 = vsel %vm1282_vm1, %v1268_v9, %v1172_v5 }
0x1277   : > { %v1979_v10 = vpop.eup %1978 }
0x1278   : > { %1271 = vrot.lane.b32.xlu0 %v1979_v10, %s2003_s19 }
0x12ea   : > { %v1272_v14 = vpop.permute.xlu0 %1271 }
0x12eb   : > { %v1274_v20 = vmul.f32 %v1977_v19, %v1272_v14 }
0x12ed   : > { %v1283_v21 = vsel %vm1282_vm1, %v1274_v20, %v1171_v54 }
0x12ee   : > { %1288 = vrot.lane.b32.xlu1 %v1283_v21, %s2004_s20 }
0x1360   : > { %v1289_v23 = vpop.permute.xlu1 %1288 }
0x1361   : > { %1815 = vmatmul.mubr.msk.f32.vlgmr.msra.gmra.mrb[8].mxu1 %vm498_vm3, %v1289_v23 }
0x1434   : > { %v1358_v17 = vpop.f32.mrb[8].mxu1 }
0x1435   : > { %v1362_v25 = vadd.f32 %v1358_v17, %v479_v24  ;;  %v1816_v26 = vpop.f32.mrb[9].mxu1 }
0x1437   : > { %1980 = vtanh.f32 %v1362_v25  ;;  %v1645_v31 = vmul.f32 -1.442695, %v1362_v25 }
0x1439   : > { %1982 = vpow2.f32 %v1645_v31 }
0x1441   : > { %v1981_v29 = vpop.eup %1980 }
0x1442   : > { %1372 = vrot.lane.b32.xlu0 %v1981_v29, %s2003_s19 }
0x1443   : > { %v1983_v32 = vpop.eup %1982 }
0x1444   : > { %v1366_v33 = vadd.f32 1.0, %v1983_v32 }
0x1446   : > { %1392 = vperm.xlu0 %1923, %v1390_v30   ;;  %1984 = vrcp.f32 %v1366_v33 }
0x1450   : > { %v1985_v15 = vpop.eup %1984 }
0x1451   : > { %v1370_v36 = vmul.f32 %v1985_v15, %v1284_v35 }
0x14b4   : > { %v1373_v18 = vpop.permute.xlu0 %1372 }
0x14b5   : > { %v1375_v34 = vmul.f32 %v1985_v15, %v1373_v18 }
0x14b7   : > { %1377 = vrot.lane.b32.xlu1 %v1375_v34, %s2004_s20 }
0x14c5   : > { %v1393_v39 = vpop.permute.xlu0 %1392 }
0x14c6   : > { %vm1394_vm4 = vcmp.eq.s32.totalorder %v1393_v39, 1 }
0x1529   : > { %v1378_v28 = vpop.permute.xlu1 %1377 }
0x152a   : > { %v1380_v37 = vadd.f32 %v1378_v28, %v1370_v36 }
0x152c   : > { %1986 = vtanh.f32 %v1380_v37  ;;  %v1396_v22 = vsel %vm1394_vm4, %v1380_v37, %v1284_v35 }
0x1536   : > { %v1987_v38 = vpop.eup %1986 }
0x1537   : > { %1383 = vrot.lane.b32.xlu1 %v1987_v38, %s2003_s19 }
0x153b   : > { %1403 = vrot.lane.b32.xlu1 %v1396_v22, %s2005_s24 }
0x15a9   : > { %v1384_v40 = vpop.permute.xlu1 %1383 }
0x15aa   : > { %v1386_v41 = vmul.f32 %v1985_v15, %v1384_v40 }
0x15ac   : > { %v1395_v42 = vsel %vm1394_vm4, %v1386_v41, %v1283_v21 }
0x15ad   : > { %1398 = vrot.lane.b32.xlu0 %v1395_v42, %s2004_s20  ;;  %v1404_v43 = vpop.permute.xlu1 %1403 }
0x15ae   : > { %1406 = vst.msk [vmem:[#allocation3] sm:$0xff] %vm498_vm3, %v1404_v43 }
0x161f   : > { %v1399_v8 = vpop.permute.xlu0 %1398 }
0x1620   : > { %1401 = vst.msk [vmem:[#allocation2] sm:$0xff] %vm498_vm3, %v1399_v8 }
0x1621 PF: > { %p1646_p6 = scmp.ne.s32.totalorder %s2073_s16, 1 }
0x1622   : > { %v1412_v4 = vld [vmem:[%s2335_s6] sm:$0xff] (!%p1646_p6)  ;;  %v1413_v11 = vld [vmem:[%s2335_s6 + $0x8] sm:$0xff] (!%p1646_p6)  ;;  %v1414_v13 = vld [vmem:[%s2335_s6 + $0x10] sm:$0xff] (!%p1646_p6)  ;;  %v2006_v16 = vmov (!%p1646_p6), 0.0|0.0   ;;  %vm2007_vm3 = vmmov (!%p1646_p6), 0   ;;  %v2008_v46 = vmov (!%p1646_p6), 0.0  }
0x1623   : > { %1410 = sbr.rel (%p1646_p6) target bundleno = 6116 (0x17e4), region = 68  ;;  %1891 = vmatprep.subr.bf16.mxu0 (!%p1646_p6), %v2006_v16  ;;  %v1892_v44 = vpack.c.bf16 (!%p1646_p6), %v1413_v11, %v1412_v4  ;;  %v1415_v45 = vld [vmem:[%s2335_s6 + $0x18] sm:$0xff] (!%p1646_p6)  ;;  %1825 = vmatprep.mubr.msk.f32.mxu0 (!%p1646_p6), %vm2007_vm3, %v2008_v46  ;;  %vm1423_vm5 = vcmask (!%p1646_p6), 261120   ;;  %v1498_v49 = vld [vmem:[%s2337_s8] sm:$0xff] (!%p1646_p6)  ;;  %v1499_v50 = vld [vmem:[%s2337_s8 + $0x8] sm:$0xff] (!%p1646_p6)  ;;  %vm1582_vm6 = vcmask (!%p1646_p6), 31744  }
0x1624   : > { %1897 = vmatprep.subr.bf16.mxu1 (!%p1646_p6), %v2006_v16  ;;  %1836 = vmatprep.mubr.msk.f32.mxu1 (!%p1646_p6), %vm2007_vm3, %v2008_v46  ;;  %v1895_v47 = vpack.c.bf16 (!%p1646_p6), %v1415_v45, %v1414_v13  ;;  %v1500_v51 = vld [vmem:[%s2337_s8 + $0x10] sm:$0xff] (!%p1646_p6)  ;;  %v1898_v52 = vpack.c.bf16 (!%p1646_p6), %v1499_v50, %v1498_v49  ;;  %v1501_v53 = vld [vmem:[%s2337_s8 + $0x18] sm:$0xff] (!%p1646_p6)  ;;  %v1647_v55 = vld [vmem:[%s2336_s7] ss:$0 sm:$0xff] (!%p1646_p6) }
0x1625   : > { %1893 = vmatpush3.bf16.msra.mxu0 (!%p1646_p6), %v1892_v44  ;;  %v1901_v54 = vpack.c.bf16 (!%p1646_p6), %v1501_v53, %v1500_v51  ;;  %v1649_v60 = vld [vmem:[%s2338_s9] ss:$0 sm:$0xff] (!%p1646_p6) }
0x1626   : > { %1894 = vmatprep.subr.bf16.mxu0 (!%p1646_p6), %v2006_v16  ;;  %1899 = vmatpush3.bf16.msra.mxu1 (!%p1646_p6), %v1898_v52 }
0x1627   : > { %v1411_v48 = vld [vmem:[#allocation2] sm:$0xff] (!%p1646_p6)  ;;  %1900 = vmatprep.subr.bf16.mxu1 (!%p1646_p6), %v2006_v16 }
0x1629   : > { %1896 = vmatpush3.bf16.msra.mxu0 (!%p1646_p6), %v1895_v47 }
0x162a   : > { %1902 = vmatpush3.bf16.msra.mxu1 %v1901_v54 }
0x162c   : > { %1826 = vmatmul.mubr.msk.f32.vlgmr.msra.gmra.mrb[0].mxu0 %vm1423_vm5, %v1411_v48 }
0x16ff   : > { %v1493_v56 = vpop.f32.mrb[0].mxu0 }
0x1700   : > { %v1494_v57 = vadd.f32 %v1647_v55, %v1493_v56  ;;  %v1827_v58 = vpop.f32.mrb[1].mxu0 }
0x1702   : > { %1988 = vtanh.f32 %v1494_v57 }
0x170c   : > { %v1989_v59 = vpop.eup %1988 }
0x170d   : > { %1837 = vmatmul.mubr.msk.f32.vlgmr.msra.gmra.mrb[0].mxu1 %vm1423_vm5, %v1989_v59 }
0x17e0   : > { %v1578_v61 = vpop.f32.mrb[0].mxu1 }
0x17e1   : > { %v1579_v62 = vadd.f32 %v1649_v60, %v1578_v61  ;;  %v1838_v63 = vpop.f32.mrb[1].mxu1 }
0x17e3   : > { %1583 = vst.msk [vmem:[%s2339_s10] sm:$0xff] %vm1582_vm6, %v1579_v62 }
0x17e4 PF: > { %s21_s15 = sadd.s32 1, %s1996_s15  }
0x17e5   : > { %p18_p7 = scmp.ge.s32.totalorder %s21_s15, 4  }
0x17e7   :  { %20 = sbr.rel (!%p18_p7) target bundleno = 2 (0x2), region = 101 }

</bundles_post_ra>
